<compile_context>
chip_gen: v5e
topology: v5e:2x2
jax: 0.10.0
libtpu: 0.0.40
codegen_flags: <defaults>
</compile_context>

<pallas_src>
import functools

import jax
import jax.numpy as jnp
from jax.experimental import pallas as pl
from jax.experimental.pallas import tpu as pltpu


# ----------------------------------------------------------------------------
# Fused Pallas kernel: embeddings -> n_layer blocks -> final LN -> lm_head
# ----------------------------------------------------------------------------
def _layernorm(v, g, b, eps=1e-5):
    mu = jnp.mean(v, axis=-1, keepdims=True)
    var = jnp.mean((v - mu) ** 2, axis=-1, keepdims=True)
    return (v - mu) * jax.lax.rsqrt(var + eps) * g + b


def _fused_forward_kernel(
    idx_ref, pos_ref, tok_ref,
    ln1g_ref, ln1b_ref, wqkv_ref, wproj_ref, bproj_ref,
    ln2g_ref, ln2b_ref, w1_ref, b1_ref, w2_ref, b2_ref,
    lnfg_ref, lnfb_ref, wlm_ref, blm_ref,
    logits_ref, *, n_head,
):
    T = idx_ref.shape[0]          # sequence length (one sequence per grid step)
    V, C = tok_ref.shape          # vocab, n_embd
    L = wqkv_ref.shape[0]         # n_layer
    nh = n_head

    # --- token embedding via one-hot matmul (exact gather; toy vocab) -------
    # TODO(synk): replace with a scalar-prefetch / DMA row gather for large V.
    idx = idx_ref[...]                                               # (T, 1)
    tok_oh = (jax.lax.broadcasted_iota(jnp.int32, (T, V), 1) == idx
              ).astype(jnp.float32)
    x = (jnp.dot(tok_oh, tok_ref[...], preferred_element_type=jnp.float32)
         + pos_ref[...])                                             # (T, C)

    # --- hoisted loop-invariant attention constants --------------------------
    allow = (jax.lax.broadcasted_iota(jnp.int32, (nh, T, T), 1)
             >= jax.lax.broadcasted_iota(jnp.int32, (nh, T, T), 2))  # causal
    neg = jnp.float32(-1e30)                 # finite fill (no -inf NaN hazard)
    scale = C ** -0.5                        # PyTorch Head scales by n_embd**-0.5

    # --- transformer blocks (static loop; weights resident for toy sizes) ---
    for l in range(L):
        # Multi-head causal self-attention, heads batched on a leading axis.
        xn = _layernorm(x, ln1g_ref[l], ln1b_ref[l])                 # (T, C)
        xh = jnp.broadcast_to(xn, (3 * nh, T, C))
        qkv = jnp.einsum('htc,hcd->htd', xh, wqkv_ref[l],
                         preferred_element_type=jnp.float32)         # (3nh, T, hs)
        q = qkv[:nh]
        k = qkv[nh:2 * nh]
        v = qkv[2 * nh:]

        s = jnp.einsum('hqd,hkd->hqk', q, k,
                       preferred_element_type=jnp.float32) * scale   # (nh, T, T)
        s = jnp.where(allow, s, neg)
        s = s - jnp.max(s, axis=-1, keepdims=True)
        p = jnp.exp(s)
        p = p * pl.reciprocal(jnp.sum(p, axis=-1, keepdims=True), approx=True)
        o = jnp.einsum('hqk,hkd->hqd', p, v,
                       preferred_element_type=jnp.float32)           # (nh, T, hs)
        # concat-over-heads + proj  ==  sum_h (o_h @ Wproj[h*hs:(h+1)*hs, :])
        sa = jnp.einsum('hqd,hdc->hqc', o, wproj_ref[l],
                        preferred_element_type=jnp.float32)          # (nh, T, C)
        x = x + jnp.sum(sa, axis=0) + bproj_ref[l]                   # residual 1

        # Feed-forward (Linear -> ReLU -> Linear); dropout == identity.
        xn2 = _layernorm(x, ln2g_ref[l], ln2b_ref[l])
        h1 = jnp.dot(xn2, w1_ref[l], preferred_element_type=jnp.float32) + b1_ref[l]
        h1 = jnp.maximum(h1, 0.0)
        x = x + jnp.dot(h1, w2_ref[l],
                        preferred_element_type=jnp.float32) + b2_ref[l]  # residual 2

    # --- final LayerNorm + lm_head (vocab padded to lane-dense width) -------
    xnf = _layernorm(x, lnfg_ref[...], lnfb_ref[...])
    logits = jnp.dot(xnf, wlm_ref[...],
                     preferred_element_type=jnp.float32) + blm_ref[...]
    logits_ref[...] = logits.astype(logits_ref.dtype)


# ----------------------------------------------------------------------------
# Wrapper (pallas_call plumbing)
# ----------------------------------------------------------------------------
def _const_spec(shape):
    zeros = (0,) * len(shape)
    return pl.BlockSpec(shape, lambda b, _z=zeros: _z)


@functools.partial(jax.jit, static_argnames=("n_head",))
def bigram_lm_forward(idx, params, *, n_head):
    """BigramLanguageModel.forward(idx, targets=None) -> logits (B, T, V)."""
    B, T = idx.shape
    V, C = params["tok_table"].shape
    L = params["wqkv"].shape[0]
    nh = n_head
    hs = C // nh
    Vp = ((V + 127) // 128) * 128            # lane-dense padded vocab

    idx_flat = idx.reshape(B * T, 1).astype(jnp.int32)
    pos_emb = params["pos_table"][:T]        # (T, C) — no in-kernel pos one-hot

    # Per-head weight stacks (heads on a leading axis, no in-kernel slicing):
    #   wqkv_h[l, s*nh + h] = W{q,k,v}[l] columns of head h, shape (C, hs)
    wqkv_h = (params["wqkv"].reshape(L, C, 3, nh, hs)
              .transpose(0, 2, 3, 1, 4).reshape(L, 3 * nh, C, hs))
    #   wproj_h[l, h] = Wproj[l][h*hs:(h+1)*hs, :]
    wproj_h = params["wproj"].reshape(L, nh, hs, C)

    # lane-dense padded lm_head (padded columns sliced off below)
    wlm_p = jnp.zeros((C, Vp), jnp.float32).at[:, :V].set(params["wlm"])
    blm_p = jnp.zeros((1, Vp), jnp.float32).at[:, :V].set(params["blm"])

    kernel = functools.partial(_fused_forward_kernel, n_head=n_head)

    logits_flat = pl.pallas_call(
        kernel,
        out_shape=jax.ShapeDtypeStruct((B * T, Vp), jnp.float32),
        grid=(B,),                                       # one sequence per step
        in_specs=[
            pl.BlockSpec((T, 1), lambda b: (b, 0)),      # token ids of seq b
            _const_spec((T, C)),                         # position embedding
            _const_spec((V, C)),                         # token table
            _const_spec((L, 1, C)), _const_spec((L, 1, C)),          # ln1 g/b
            _const_spec((L, 3 * nh, C, hs)),                         # Wq|Wk|Wv per head
            _const_spec((L, nh, hs, C)),                             # Wproj per head
            _const_spec((L, 1, C)),                                  # bproj
            _const_spec((L, 1, C)), _const_spec((L, 1, C)),          # ln2 g/b
            _const_spec((L, C, 4 * C)), _const_spec((L, 1, 4 * C)),  # w1/b1
            _const_spec((L, 4 * C, C)), _const_spec((L, 1, C)),      # w2/b2
            _const_spec((1, C)), _const_spec((1, C)),                # lnf g/b
            _const_spec((C, Vp)), _const_spec((1, Vp)),              # lm_head
        ],
        out_specs=pl.BlockSpec((T, Vp), lambda b: (b, 0)),
        compiler_params=pltpu.CompilerParams(
            dimension_semantics=("parallel",)),          # v7x megacore splits B
    )(idx_flat, pos_emb, params["tok_table"],
      params["ln1_g"], params["ln1_b"],
      wqkv_h, wproj_h, params["bproj"],
      params["ln2_g"], params["ln2_b"],
      params["w1"], params["b1"],
      params["w2"], params["b2"],
      params["lnf_g"], params["lnf_b"],
      wlm_p, blm_p)

    return logits_flat[:, :V].reshape(B, T, V)
    # TODO(synk): cross-entropy loss (targets branch) and generate() multinomial
    # sampling are host-side control flow / RNG, not implemented as kernels.


# ----------------------------------------------------------------------------
# Pure-JAX reference (mirrors the PyTorch module structure)
# ----------------------------------------------------------------------------
def ref_forward(idx, params, n_head):
    B, T = idx.shape
    x = params["tok_table"][idx] + params["pos_table"][jnp.arange(T)][None]
    C = x.shape[-1]
    hs = C // n_head
    L = params["wqkv"].shape[0]
    mask = jnp.tril(jnp.ones((T, T), bool))

    def ln(v, g, b):
        mu = v.mean(-1, keepdims=True)
        var = ((v - mu) ** 2).mean(-1, keepdims=True)
        return (v - mu) / jnp.sqrt(var + 1e-5) * g + b

    for l in range(L):
        xn = ln(x, params["ln1_g"][l], params["ln1_b"][l])
        wqkv = params["wqkv"][l]
        outs = []
        for h in range(n_head):
            q = xn @ wqkv[:, h * hs:(h + 1) * hs]
            k = xn @ wqkv[:, C + h * hs:C + (h + 1) * hs]
            v = xn @ wqkv[:, 2 * C + h * hs:2 * C + (h + 1) * hs]
            wei = (q @ jnp.swapaxes(k, -1, -2)) * (C ** -0.5)
            wei = jnp.where(mask, wei, -jnp.inf)
            wei = jax.nn.softmax(wei, axis=-1)
            outs.append(wei @ v)
        attn = jnp.concatenate(outs, -1) @ params["wproj"][l] + params["bproj"][l]
        x = x + attn
        xn2 = ln(x, params["ln2_g"][l], params["ln2_b"][l])
        h1 = jax.nn.relu(xn2 @ params["w1"][l] + params["b1"][l])
        x = x + h1 @ params["w2"][l] + params["b2"][l]
    xn = ln(x, params["lnf_g"], params["lnf_b"])
    return xn @ params["wlm"] + params["blm"]


# ----------------------------------------------------------------------------
# Deterministic parameter construction + driver
# ----------------------------------------------------------------------------
def init_params(key, vocab_size, n_embd, n_head, n_layer, block_size):
    C, L = n_embd, n_layer
    ks = jax.random.split(key, 12)
    w = lambda k, s: (0.02 * jax.random.normal(k, s)).astype(jnp.float32)
    return dict(
        tok_table=w(ks[0], (vocab_size, C)),
        pos_table=w(ks[1], (block_size, C)),
        ln1_g=jnp.ones((L, 1, C), jnp.float32),
        ln1_b=jnp.zeros((L, 1, C), jnp.float32),
        wqkv=w(ks[2], (L, C, 3 * C)),        # [Wq | Wk | Wv], head-major columns
        wproj=w(ks[3], (L, C, C)),
        bproj=w(ks[4], (L, 1, C)),
        ln2_g=jnp.ones((L, 1, C), jnp.float32),
        ln2_b=jnp.zeros((L, 1, C), jnp.float32),
        w1=w(ks[5], (L, C, 4 * C)),
        b1=w(ks[6], (L, 1, 4 * C)),
        w2=w(ks[7], (L, 4 * C, C)),
        b2=w(ks[8], (L, 1, C)),
        lnf_g=jnp.ones((1, C), jnp.float32),
        lnf_b=jnp.zeros((1, C), jnp.float32),
        wlm=w(ks[9], (C, vocab_size)),
        blm=w(ks[10], (1, vocab_size)),
    )


if __name__ == "__main__":
    hyper_p = dict(n_embd=32, n_head=4, n_layer=2, block_size=8, dropout=0.0)
    vocab_size = 64
    B, T = 2, hyper_p["block_size"]

    key = jax.random.PRNGKey(0)
    k_param, k_idx = jax.random.split(key)
    params = init_params(k_param, vocab_size, hyper_p["n_embd"],
                         hyper_p["n_head"], hyper_p["n_layer"],
                         hyper_p["block_size"])
    idx = jax.random.randint(k_idx, (B, T), 0, vocab_size, dtype=jnp.int32)

    logits = bigram_lm_forward(idx, params, n_head=hyper_p["n_head"])
    logits = jax.block_until_ready(logits)
    assert logits.shape == (B, T, vocab_size)

    ref = jax.block_until_ready(ref_forward(idx, params, hyper_p["n_head"]))
    max_err = float(jnp.max(jnp.abs(logits - ref)))
    # 1e-3 tolerance: approx EUP reciprocal in softmax + MXU f32 matmul paths.
    assert jnp.allclose(logits, ref, atol=1e-3, rtol=1e-3), \
        f"mismatch vs reference, max |err| = {max_err}"
    print("KERNEL_OK")
</pallas_src>

<mosaic_0001>
module attributes {stable_mosaic.version = 11 : i64} {
  func.func @_fused_forward_kernel(%arg0: i32, %arg1: memref<8x1xi32, #tpu.memory_space<vmem>>, %arg2: memref<8x32xf32, #tpu.memory_space<vmem>>, %arg3: memref<64x32xf32, #tpu.memory_space<vmem>>, %arg4: memref<2x1x32xf32, #tpu.memory_space<vmem>>, %arg5: memref<2x1x32xf32, #tpu.memory_space<vmem>>, %arg6: memref<2x12x32x8xf32, #tpu.memory_space<vmem>>, %arg7: memref<2x4x8x32xf32, #tpu.memory_space<vmem>>, %arg8: memref<2x1x32xf32, #tpu.memory_space<vmem>>, %arg9: memref<2x1x32xf32, #tpu.memory_space<vmem>>, %arg10: memref<2x1x32xf32, #tpu.memory_space<vmem>>, %arg11: memref<2x32x128xf32, #tpu.memory_space<vmem>>, %arg12: memref<2x1x128xf32, #tpu.memory_space<vmem>>, %arg13: memref<2x128x32xf32, #tpu.memory_space<vmem>>, %arg14: memref<2x1x32xf32, #tpu.memory_space<vmem>>, %arg15: memref<1x32xf32, #tpu.memory_space<vmem>>, %arg16: memref<1x32xf32, #tpu.memory_space<vmem>>, %arg17: memref<32x128xf32, #tpu.memory_space<vmem>>, %arg18: memref<1x128xf32, #tpu.memory_space<vmem>>, %arg19: memref<8x128xf32, #tpu.memory_space<vmem>>) attributes {dimension_semantics = [#tpu.dimension_semantics<parallel>], iteration_bounds = array<i64: 2>, scalar_prefetch = 0 : i64, scratch_operands = 0 : i64, tpu.core_type = #tpu.core_type<tc>, window_params = [{transform_indices = @transform_0, window_bounds = array<i64: 8, 1>}, {pipeline_mode = #tpu.pipeline_mode<synchronous>, transform_indices = @transform_1, window_bounds = array<i64: 8, 32>}, {pipeline_mode = #tpu.pipeline_mode<synchronous>, transform_indices = @transform_2, window_bounds = array<i64: 64, 32>}, {pipeline_mode = #tpu.pipeline_mode<synchronous>, transform_indices = @transform_3, window_bounds = array<i64: 2, 1, 32>}, {pipeline_mode = #tpu.pipeline_mode<synchronous>, transform_indices = @transform_4, window_bounds = array<i64: 2, 1, 32>}, {pipeline_mode = #tpu.pipeline_mode<synchronous>, transform_indices = @transform_5, window_bounds = array<i64: 2, 12, 32, 8>}, {pipeline_mode = #tpu.pipeline_mode<synchronous>, transform_indices = @transform_6, window_bounds = array<i64: 2, 4, 8, 32>}, {pipeline_mode = #tpu.pipeline_mode<synchronous>, transform_indices = @transform_7, window_bounds = array<i64: 2, 1, 32>}, {pipeline_mode = #tpu.pipeline_mode<synchronous>, transform_indices = @transform_8, window_bounds = array<i64: 2, 1, 32>}, {pipeline_mode = #tpu.pipeline_mode<synchronous>, transform_indices = @transform_9, window_bounds = array<i64: 2, 1, 32>}, {pipeline_mode = #tpu.pipeline_mode<synchronous>, transform_indices = @transform_10, window_bounds = array<i64: 2, 32, 128>}, {pipeline_mode = #tpu.pipeline_mode<synchronous>, transform_indices = @transform_11, window_bounds = array<i64: 2, 1, 128>}, {pipeline_mode = #tpu.pipeline_mode<synchronous>, transform_indices = @transform_12, window_bounds = array<i64: 2, 128, 32>}, {pipeline_mode = #tpu.pipeline_mode<synchronous>, transform_indices = @transform_13, window_bounds = array<i64: 2, 1, 32>}, {pipeline_mode = #tpu.pipeline_mode<synchronous>, transform_indices = @transform_14, window_bounds = array<i64: 1, 32>}, {pipeline_mode = #tpu.pipeline_mode<synchronous>, transform_indices = @transform_15, window_bounds = array<i64: 1, 32>}, {pipeline_mode = #tpu.pipeline_mode<synchronous>, transform_indices = @transform_16, window_bounds = array<i64: 32, 128>}, {pipeline_mode = #tpu.pipeline_mode<synchronous>, transform_indices = @transform_17, window_bounds = array<i64: 1, 128>}, {transform_indices = @transform_18, window_bounds = array<i64: 8, 128>}]} {
    %c0 = arith.constant 0 : index
    %c0_0 = arith.constant 0 : index
    %0 = vector.load %arg1[%c0, %c0_0] : memref<8x1xi32, #tpu.memory_space<vmem>>, vector<8x1xi32>
    %1 = tpu.iota {dimensions = array<i32: 1>} : vector<8x64xi32>
    %2 = vector.broadcast %0 : vector<8x1xi32> to vector<8x64xi32>
    %3 = arith.cmpi eq, %1, %2 : vector<8x64xi32>
    %4 = arith.extui %3 : vector<8x64xi1> to vector<8x64xi32>
    %5 = arith.sitofp %4 : vector<8x64xi32> to vector<8x64xf32>
    %c0_1 = arith.constant 0 : index
    %c0_2 = arith.constant 0 : index
    %6 = vector.load %arg3[%c0_1, %c0_2] : memref<64x32xf32, #tpu.memory_space<vmem>>, vector<64x32xf32>
    %cst = arith.constant dense<0.000000e+00> : vector<8x32xf32>
    %7 = tpu.matmul %5, %6, %cst {dimension_numbers = #tpu.dot_dimension_numbers<[1], [0], [0], [1], [0, 0, 1, 1], [], []>} : vector<8x64xf32>, vector<64x32xf32>, vector<8x32xf32> -> vector<8x32xf32>
    %c0_3 = arith.constant 0 : index
    %c0_4 = arith.constant 0 : index
    %8 = vector.load %arg2[%c0_3, %c0_4] : memref<8x32xf32, #tpu.memory_space<vmem>>, vector<8x32xf32>
    %9 = arith.addf %7, %8 : vector<8x32xf32>
    %10 = tpu.iota {dimensions = array<i32: 1>} : vector<4x8x8xi32>
    %11 = tpu.iota {dimensions = array<i32: 2>} : vector<4x8x8xi32>
    %12 = arith.cmpi sge, %10, %11 : vector<4x8x8xi32>
    %c0_5 = arith.constant 0 : index
    %c0_6 = arith.constant 0 : index
    %c0_7 = arith.constant 0 : index
    %13 = vector.load %arg4[%c0_5, %c0_6, %c0_7] : memref<2x1x32xf32, #tpu.memory_space<vmem>>, vector<1x1x32xf32>
    %14 = vector.shape_cast %13 : vector<1x1x32xf32> to vector<1x32xf32>
    %c0_8 = arith.constant 0 : index
    %c0_9 = arith.constant 0 : index
    %c0_10 = arith.constant 0 : index
    %15 = vector.load %arg5[%c0_8, %c0_9, %c0_10] : memref<2x1x32xf32, #tpu.memory_space<vmem>>, vector<1x1x32xf32>
    %16 = vector.shape_cast %15 : vector<1x1x32xf32> to vector<1x32xf32>
    %cst_11 = arith.constant dense<0.000000e+00> : vector<8xf32>
    %17 = vector.multi_reduction <add>, %9, %cst_11 [1] : vector<8x32xf32> to vector<8xf32>
    %18 = vector.shape_cast %17 : vector<8xf32> to vector<8x1xf32>
    %cst_12 = arith.constant 3.200000e+01 : f32
    %19 = vector.broadcast %cst_12 : f32 to vector<8x1xf32>
    %20 = arith.divf %18, %19 : vector<8x1xf32>
    %21 = vector.broadcast %20 : vector<8x1xf32> to vector<8x32xf32>
    %22 = arith.subf %9, %21 : vector<8x32xf32>
    %23 = arith.mulf %22, %22 : vector<8x32xf32>
    %cst_13 = arith.constant dense<0.000000e+00> : vector<8xf32>
    %24 = vector.multi_reduction <add>, %23, %cst_13 [1] : vector<8x32xf32> to vector<8xf32>
    %25 = vector.shape_cast %24 : vector<8xf32> to vector<8x1xf32>
    %cst_14 = arith.constant 3.200000e+01 : f32
    %26 = vector.broadcast %cst_14 : f32 to vector<8x1xf32>
    %27 = arith.divf %25, %26 : vector<8x1xf32>
    %28 = vector.broadcast %20 : vector<8x1xf32> to vector<8x32xf32>
    %29 = arith.subf %9, %28 : vector<8x32xf32>
    %cst_15 = arith.constant 9.99999974E-6 : f32
    %30 = vector.broadcast %cst_15 : f32 to vector<8x1xf32>
    %31 = arith.addf %27, %30 : vector<8x1xf32>
    %32 = math.rsqrt %31 : vector<8x1xf32>
    %33 = vector.broadcast %32 : vector<8x1xf32> to vector<8x32xf32>
    %34 = arith.mulf %29, %33 : vector<8x32xf32>
    %35 = vector.broadcast %14 : vector<1x32xf32> to vector<8x32xf32>
    %36 = arith.mulf %34, %35 : vector<8x32xf32>
    %37 = vector.broadcast %16 : vector<1x32xf32> to vector<8x32xf32>
    %38 = arith.addf %36, %37 : vector<8x32xf32>
    %39 = vector.shape_cast %38 : vector<8x32xf32> to vector<1x8x32xf32>
    %40 = vector.broadcast %39 : vector<1x8x32xf32> to vector<12x8x32xf32>
    %c0_16 = arith.constant 0 : index
    %c0_17 = arith.constant 0 : index
    %c0_18 = arith.constant 0 : index
    %c0_19 = arith.constant 0 : index
    %41 = vector.load %arg6[%c0_16, %c0_17, %c0_18, %c0_19] : memref<2x12x32x8xf32, #tpu.memory_space<vmem>>, vector<1x12x32x8xf32>
    %42 = vector.shape_cast %41 : vector<1x12x32x8xf32> to vector<12x32x8xf32>
    "tpu.trace_start"() <{level = 10 : i32, message = "htc,hcd->htd"}> : () -> ()
    %cst_20 = arith.constant dense<0.000000e+00> : vector<12x8x8xf32>
    %43 = tpu.matmul %40, %42, %cst_20 {dimension_numbers = #tpu.dot_dimension_numbers<[2], [1], [1], [2], [0, 0, 0, 1, 1, 2], [0], [0]>} : vector<12x8x32xf32>, vector<12x32x8xf32>, vector<12x8x8xf32> -> vector<12x8x8xf32>
    "tpu.trace_stop"() : () -> ()
    %44 = vector.extract_strided_slice %43 {offsets = [0, 0, 0], sizes = [4, 8, 8], strides = [1, 1, 1]} : vector<12x8x8xf32> to vector<4x8x8xf32>
    %45 = vector.extract_strided_slice %43 {offsets = [4, 0, 0], sizes = [4, 8, 8], strides = [1, 1, 1]} : vector<12x8x8xf32> to vector<4x8x8xf32>
    %46 = vector.extract_strided_slice %43 {offsets = [8, 0, 0], sizes = [4, 8, 8], strides = [1, 1, 1]} : vector<12x8x8xf32> to vector<4x8x8xf32>
    "tpu.trace_start"() <{level = 10 : i32, message = "hqd,hkd->hqk"}> : () -> ()
    %cst_21 = arith.constant dense<0.000000e+00> : vector<4x8x8xf32>
    %47 = tpu.matmul %44, %45, %cst_21 {dimension_numbers = #tpu.dot_dimension_numbers<[2], [2], [1], [1], [0, 0, 0, 1, 1, 1], [0], [0]>} : vector<4x8x8xf32>, vector<4x8x8xf32>, vector<4x8x8xf32> -> vector<4x8x8xf32>
    "tpu.trace_stop"() : () -> ()
    %cst_22 = arith.constant 0.176776692 : f32
    %48 = vector.broadcast %cst_22 : f32 to vector<4x8x8xf32>
    %49 = arith.mulf %47, %48 : vector<4x8x8xf32>
    %cst_23 = arith.constant -1.000000e+30 : f32
    %50 = vector.broadcast %cst_23 : f32 to vector<4x8x8xf32>
    %51 = arith.select %12, %49, %50 : vector<4x8x8xi1>, vector<4x8x8xf32>
    %cst_24 = arith.constant dense<0xFF800000> : vector<4x8xf32>
    %52 = vector.multi_reduction <maximumf>, %51, %cst_24 [2] : vector<4x8x8xf32> to vector<4x8xf32>
    %53 = vector.shape_cast %52 : vector<4x8xf32> to vector<4x8x1xf32>
    %54 = vector.broadcast %53 : vector<4x8x1xf32> to vector<4x8x8xf32>
    %55 = arith.subf %51, %54 : vector<4x8x8xf32>
    %56 = math.exp %55 : vector<4x8x8xf32>
    %cst_25 = arith.constant dense<0.000000e+00> : vector<4x8xf32>
    %57 = vector.multi_reduction <add>, %56, %cst_25 [2] : vector<4x8x8xf32> to vector<4x8xf32>
    %58 = vector.shape_cast %57 : vector<4x8xf32> to vector<4x8x1xf32>
    %59 = tpu.reciprocal %58 {approx = true} : vector<4x8x1xf32> -> vector<4x8x1xf32>
    %60 = vector.broadcast %59 : vector<4x8x1xf32> to vector<4x8x8xf32>
    %61 = arith.mulf %56, %60 : vector<4x8x8xf32>
    "tpu.trace_start"() <{level = 10 : i32, message = "hqk,hkd->hqd"}> : () -> ()
    %cst_26 = arith.constant dense<0.000000e+00> : vector<4x8x8xf32>
    %62 = tpu.matmul %61, %46, %cst_26 {dimension_numbers = #tpu.dot_dimension_numbers<[2], [1], [1], [2], [0, 0, 0, 1, 1, 2], [0], [0]>} : vector<4x8x8xf32>, vector<4x8x8xf32>, vector<4x8x8xf32> -> vector<4x8x8xf32>
    "tpu.trace_stop"() : () -> ()
    %c0_27 = arith.constant 0 : index
    %c0_28 = arith.constant 0 : index
    %c0_29 = arith.constant 0 : index
    %c0_30 = arith.constant 0 : index
    %63 = vector.load %arg7[%c0_27, %c0_28, %c0_29, %c0_30] : memref<2x4x8x32xf32, #tpu.memory_space<vmem>>, vector<1x4x8x32xf32>
    %64 = vector.shape_cast %63 : vector<1x4x8x32xf32> to vector<4x8x32xf32>
    "tpu.trace_start"() <{level = 10 : i32, message = "hqd,hdc->hqc"}> : () -> ()
    %cst_31 = arith.constant dense<0.000000e+00> : vector<4x8x32xf32>
    %65 = tpu.matmul %62, %64, %cst_31 {dimension_numbers = #tpu.dot_dimension_numbers<[2], [1], [1], [2], [0, 0, 0, 1, 1, 2], [0], [0]>} : vector<4x8x8xf32>, vector<4x8x32xf32>, vector<4x8x32xf32> -> vector<4x8x32xf32>
    "tpu.trace_stop"() : () -> ()
    %cst_32 = arith.constant dense<0.000000e+00> : vector<8x32xf32>
    %66 = vector.multi_reduction <add>, %65, %cst_32 [0] : vector<4x8x32xf32> to vector<8x32xf32>
    %67 = arith.addf %9, %66 : vector<8x32xf32>
    %c0_33 = arith.constant 0 : index
    %c0_34 = arith.constant 0 : index
    %c0_35 = arith.constant 0 : index
    %68 = vector.load %arg8[%c0_33, %c0_34, %c0_35] : memref<2x1x32xf32, #tpu.memory_space<vmem>>, vector<1x1x32xf32>
    %69 = vector.shape_cast %68 : vector<1x1x32xf32> to vector<1x32xf32>
    %70 = vector.broadcast %69 : vector<1x32xf32> to vector<8x32xf32>
    %71 = arith.addf %67, %70 : vector<8x32xf32>
    %c0_36 = arith.constant 0 : index
    %c0_37 = arith.constant 0 : index
    %c0_38 = arith.constant 0 : index
    %72 = vector.load %arg9[%c0_36, %c0_37, %c0_38] : memref<2x1x32xf32, #tpu.memory_space<vmem>>, vector<1x1x32xf32>
    %73 = vector.shape_cast %72 : vector<1x1x32xf32> to vector<1x32xf32>
    %c0_39 = arith.constant 0 : index
    %c0_40 = arith.constant 0 : index
    %c0_41 = arith.constant 0 : index
    %74 = vector.load %arg10[%c0_39, %c0_40, %c0_41] : memref<2x1x32xf32, #tpu.memory_space<vmem>>, vector<1x1x32xf32>
    %75 = vector.shape_cast %74 : vector<1x1x32xf32> to vector<1x32xf32>
    %cst_42 = arith.constant dense<0.000000e+00> : vector<8xf32>
    %76 = vector.multi_reduction <add>, %71, %cst_42 [1] : vector<8x32xf32> to vector<8xf32>
    %77 = vector.shape_cast %76 : vector<8xf32> to vector<8x1xf32>
    %cst_43 = arith.constant 3.200000e+01 : f32
    %78 = vector.broadcast %cst_43 : f32 to vector<8x1xf32>
    %79 = arith.divf %77, %78 : vector<8x1xf32>
    %80 = vector.broadcast %79 : vector<8x1xf32> to vector<8x32xf32>
    %81 = arith.subf %71, %80 : vector<8x32xf32>
    %82 = arith.mulf %81, %81 : vector<8x32xf32>
    %cst_44 = arith.constant dense<0.000000e+00> : vector<8xf32>
    %83 = vector.multi_reduction <add>, %82, %cst_44 [1] : vector<8x32xf32> to vector<8xf32>
    %84 = vector.shape_cast %83 : vector<8xf32> to vector<8x1xf32>
    %cst_45 = arith.constant 3.200000e+01 : f32
    %85 = vector.broadcast %cst_45 : f32 to vector<8x1xf32>
    %86 = arith.divf %84, %85 : vector<8x1xf32>
    %87 = vector.broadcast %79 : vector<8x1xf32> to vector<8x32xf32>
    %88 = arith.subf %71, %87 : vector<8x32xf32>
    %cst_46 = arith.constant 9.99999974E-6 : f32
    %89 = vector.broadcast %cst_46 : f32 to vector<8x1xf32>
    %90 = arith.addf %86, %89 : vector<8x1xf32>
    %91 = math.rsqrt %90 : vector<8x1xf32>
    %92 = vector.broadcast %91 : vector<8x1xf32> to vector<8x32xf32>
    %93 = arith.mulf %88, %92 : vector<8x32xf32>
    %94 = vector.broadcast %73 : vector<1x32xf32> to vector<8x32xf32>
    %95 = arith.mulf %93, %94 : vector<8x32xf32>
    %96 = vector.broadcast %75 : vector<1x32xf32> to vector<8x32xf32>
    %97 = arith.addf %95, %96 : vector<8x32xf32>
    %c0_47 = arith.constant 0 : index
    %c0_48 = arith.constant 0 : index
    %c0_49 = arith.constant 0 : index
    %98 = vector.load %arg11[%c0_47, %c0_48, %c0_49] : memref<2x32x128xf32, #tpu.memory_space<vmem>>, vector<1x32x128xf32>
    %99 = vector.shape_cast %98 : vector<1x32x128xf32> to vector<32x128xf32>
    %cst_50 = arith.constant dense<0.000000e+00> : vector<8x128xf32>
    %100 = tpu.matmul %97, %99, %cst_50 {dimension_numbers = #tpu.dot_dimension_numbers<[1], [0], [0], [1], [0, 0, 1, 1], [], []>} : vector<8x32xf32>, vector<32x128xf32>, vector<8x128xf32> -> vector<8x128xf32>
    %c0_51 = arith.constant 0 : index
    %c0_52 = arith.constant 0 : index
    %c0_53 = arith.constant 0 : index
    %101 = vector.load %arg12[%c0_51, %c0_52, %c0_53] : memref<2x1x128xf32, #tpu.memory_space<vmem>>, vector<1x1x128xf32>
    %102 = vector.shape_cast %101 : vector<1x1x128xf32> to vector<1x128xf32>
    %103 = vector.broadcast %102 : vector<1x128xf32> to vector<8x128xf32>
    %104 = arith.addf %100, %103 : vector<8x128xf32>
    %cst_54 = arith.constant 0.000000e+00 : f32
    %105 = vector.broadcast %cst_54 : f32 to vector<8x128xf32>
    %106 = arith.maximumf %104, %105 : vector<8x128xf32>
    %c0_55 = arith.constant 0 : index
    %c0_56 = arith.constant 0 : index
    %c0_57 = arith.constant 0 : index
    %107 = vector.load %arg13[%c0_55, %c0_56, %c0_57] : memref<2x128x32xf32, #tpu.memory_space<vmem>>, vector<1x128x32xf32>
    %108 = vector.shape_cast %107 : vector<1x128x32xf32> to vector<128x32xf32>
    %cst_58 = arith.constant dense<0.000000e+00> : vector<8x32xf32>
    %109 = tpu.matmul %106, %108, %cst_58 {dimension_numbers = #tpu.dot_dimension_numbers<[1], [0], [0], [1], [0, 0, 1, 1], [], []>} : vector<8x128xf32>, vector<128x32xf32>, vector<8x32xf32> -> vector<8x32xf32>
    %110 = arith.addf %71, %109 : vector<8x32xf32>
    %c0_59 = arith.constant 0 : index
    %c0_60 = arith.constant 0 : index
    %c0_61 = arith.constant 0 : index
    %111 = vector.load %arg14[%c0_59, %c0_60, %c0_61] : memref<2x1x32xf32, #tpu.memory_space<vmem>>, vector<1x1x32xf32>
    %112 = vector.shape_cast %111 : vector<1x1x32xf32> to vector<1x32xf32>
    %113 = vector.broadcast %112 : vector<1x32xf32> to vector<8x32xf32>
    %114 = arith.addf %110, %113 : vector<8x32xf32>
    %c1 = arith.constant 1 : index
    %c0_62 = arith.constant 0 : index
    %c0_63 = arith.constant 0 : index
    %115 = vector.load %arg4[%c1, %c0_62, %c0_63] : memref<2x1x32xf32, #tpu.memory_space<vmem>>, vector<1x1x32xf32>
    %116 = vector.shape_cast %115 : vector<1x1x32xf32> to vector<1x32xf32>
    %c1_64 = arith.constant 1 : index
    %c0_65 = arith.constant 0 : index
    %c0_66 = arith.constant 0 : index
    %117 = vector.load %arg5[%c1_64, %c0_65, %c0_66] : memref<2x1x32xf32, #tpu.memory_space<vmem>>, vector<1x1x32xf32>
    %118 = vector.shape_cast %117 : vector<1x1x32xf32> to vector<1x32xf32>
    %cst_67 = arith.constant dense<0.000000e+00> : vector<8xf32>
    %119 = vector.multi_reduction <add>, %114, %cst_67 [1] : vector<8x32xf32> to vector<8xf32>
    %120 = vector.shape_cast %119 : vector<8xf32> to vector<8x1xf32>
    %cst_68 = arith.constant 3.200000e+01 : f32
    %121 = vector.broadcast %cst_68 : f32 to vector<8x1xf32>
    %122 = arith.divf %120, %121 : vector<8x1xf32>
    %123 = vector.broadcast %122 : vector<8x1xf32> to vector<8x32xf32>
    %124 = arith.subf %114, %123 : vector<8x32xf32>
    %125 = arith.mulf %124, %124 : vector<8x32xf32>
    %cst_69 = arith.constant dense<0.000000e+00> : vector<8xf32>
    %126 = vector.multi_reduction <add>, %125, %cst_69 [1] : vector<8x32xf32> to vector<8xf32>
    %127 = vector.shape_cast %126 : vector<8xf32> to vector<8x1xf32>
    %cst_70 = arith.constant 3.200000e+01 : f32
    %128 = vector.broadcast %cst_70 : f32 to vector<8x1xf32>
    %129 = arith.divf %127, %128 : vector<8x1xf32>
    %130 = vector.broadcast %122 : vector<8x1xf32> to vector<8x32xf32>
    %131 = arith.subf %114, %130 : vector<8x32xf32>
    %cst_71 = arith.constant 9.99999974E-6 : f32
    %132 = vector.broadcast %cst_71 : f32 to vector<8x1xf32>
    %133 = arith.addf %129, %132 : vector<8x1xf32>
    %134 = math.rsqrt %133 : vector<8x1xf32>
    %135 = vector.broadcast %134 : vector<8x1xf32> to vector<8x32xf32>
    %136 = arith.mulf %131, %135 : vector<8x32xf32>
    %137 = vector.broadcast %116 : vector<1x32xf32> to vector<8x32xf32>
    %138 = arith.mulf %136, %137 : vector<8x32xf32>
    %139 = vector.broadcast %118 : vector<1x32xf32> to vector<8x32xf32>
    %140 = arith.addf %138, %139 : vector<8x32xf32>
    %141 = vector.shape_cast %140 : vector<8x32xf32> to vector<1x8x32xf32>
    %142 = vector.broadcast %141 : vector<1x8x32xf32> to vector<12x8x32xf32>
    %c1_72 = arith.constant 1 : index
    %c0_73 = arith.constant 0 : index
    %c0_74 = arith.constant 0 : index
    %c0_75 = arith.constant 0 : index
    %143 = vector.load %arg6[%c1_72, %c0_73, %c0_74, %c0_75] : memref<2x12x32x8xf32, #tpu.memory_space<vmem>>, vector<1x12x32x8xf32>
    %144 = vector.shape_cast %143 : vector<1x12x32x8xf32> to vector<12x32x8xf32>
    "tpu.trace_start"() <{level = 10 : i32, message = "htc,hcd->htd"}> : () -> ()
    %cst_76 = arith.constant dense<0.000000e+00> : vector<12x8x8xf32>
    %145 = tpu.matmul %142, %144, %cst_76 {dimension_numbers = #tpu.dot_dimension_numbers<[2], [1], [1], [2], [0, 0, 0, 1, 1, 2], [0], [0]>} : vector<12x8x32xf32>, vector<12x32x8xf32>, vector<12x8x8xf32> -> vector<12x8x8xf32>
    "tpu.trace_stop"() : () -> ()
    %146 = vector.extract_strided_slice %145 {offsets = [0, 0, 0], sizes = [4, 8, 8], strides = [1, 1, 1]} : vector<12x8x8xf32> to vector<4x8x8xf32>
    %147 = vector.extract_strided_slice %145 {offsets = [4, 0, 0], sizes = [4, 8, 8], strides = [1, 1, 1]} : vector<12x8x8xf32> to vector<4x8x8xf32>
    %148 = vector.extract_strided_slice %145 {offsets = [8, 0, 0], sizes = [4, 8, 8], strides = [1, 1, 1]} : vector<12x8x8xf32> to vector<4x8x8xf32>
    "tpu.trace_start"() <{level = 10 : i32, message = "hqd,hkd->hqk"}> : () -> ()
    %cst_77 = arith.constant dense<0.000000e+00> : vector<4x8x8xf32>
    %149 = tpu.matmul %146, %147, %cst_77 {dimension_numbers = #tpu.dot_dimension_numbers<[2], [2], [1], [1], [0, 0, 0, 1, 1, 1], [0], [0]>} : vector<4x8x8xf32>, vector<4x8x8xf32>, vector<4x8x8xf32> -> vector<4x8x8xf32>
    "tpu.trace_stop"() : () -> ()
    %cst_78 = arith.constant 0.176776692 : f32
    %150 = vector.broadcast %cst_78 : f32 to vector<4x8x8xf32>
    %151 = arith.mulf %149, %150 : vector<4x8x8xf32>
    %cst_79 = arith.constant -1.000000e+30 : f32
    %152 = vector.broadcast %cst_79 : f32 to vector<4x8x8xf32>
    %153 = arith.select %12, %151, %152 : vector<4x8x8xi1>, vector<4x8x8xf32>
    %cst_80 = arith.constant dense<0xFF800000> : vector<4x8xf32>
    %154 = vector.multi_reduction <maximumf>, %153, %cst_80 [2] : vector<4x8x8xf32> to vector<4x8xf32>
    %155 = vector.shape_cast %154 : vector<4x8xf32> to vector<4x8x1xf32>
    %156 = vector.broadcast %155 : vector<4x8x1xf32> to vector<4x8x8xf32>
    %157 = arith.subf %153, %156 : vector<4x8x8xf32>
    %158 = math.exp %157 : vector<4x8x8xf32>
    %cst_81 = arith.constant dense<0.000000e+00> : vector<4x8xf32>
    %159 = vector.multi_reduction <add>, %158, %cst_81 [2] : vector<4x8x8xf32> to vector<4x8xf32>
    %160 = vector.shape_cast %159 : vector<4x8xf32> to vector<4x8x1xf32>
    %161 = tpu.reciprocal %160 {approx = true} : vector<4x8x1xf32> -> vector<4x8x1xf32>
    %162 = vector.broadcast %161 : vector<4x8x1xf32> to vector<4x8x8xf32>
    %163 = arith.mulf %158, %162 : vector<4x8x8xf32>
    "tpu.trace_start"() <{level = 10 : i32, message = "hqk,hkd->hqd"}> : () -> ()
    %cst_82 = arith.constant dense<0.000000e+00> : vector<4x8x8xf32>
    %164 = tpu.matmul %163, %148, %cst_82 {dimension_numbers = #tpu.dot_dimension_numbers<[2], [1], [1], [2], [0, 0, 0, 1, 1, 2], [0], [0]>} : vector<4x8x8xf32>, vector<4x8x8xf32>, vector<4x8x8xf32> -> vector<4x8x8xf32>
    "tpu.trace_stop"() : () -> ()
    %c1_83 = arith.constant 1 : index
    %c0_84 = arith.constant 0 : index
    %c0_85 = arith.constant 0 : index
    %c0_86 = arith.constant 0 : index
    %165 = vector.load %arg7[%c1_83, %c0_84, %c0_85, %c0_86] : memref<2x4x8x32xf32, #tpu.memory_space<vmem>>, vector<1x4x8x32xf32>
    %166 = vector.shape_cast %165 : vector<1x4x8x32xf32> to vector<4x8x32xf32>
    "tpu.trace_start"() <{level = 10 : i32, message = "hqd,hdc->hqc"}> : () -> ()
    %cst_87 = arith.constant dense<0.000000e+00> : vector<4x8x32xf32>
    %167 = tpu.matmul %164, %166, %cst_87 {dimension_numbers = #tpu.dot_dimension_numbers<[2], [1], [1], [2], [0, 0, 0, 1, 1, 2], [0], [0]>} : vector<4x8x8xf32>, vector<4x8x32xf32>, vector<4x8x32xf32> -> vector<4x8x32xf32>
    "tpu.trace_stop"() : () -> ()
    %cst_88 = arith.constant dense<0.000000e+00> : vector<8x32xf32>
    %168 = vector.multi_reduction <add>, %167, %cst_88 [0] : vector<4x8x32xf32> to vector<8x32xf32>
    %169 = arith.addf %114, %168 : vector<8x32xf32>
    %c1_89 = arith.constant 1 : index
    %c0_90 = arith.constant 0 : index
    %c0_91 = arith.constant 0 : index
    %170 = vector.load %arg8[%c1_89, %c0_90, %c0_91] : memref<2x1x32xf32, #tpu.memory_space<vmem>>, vector<1x1x32xf32>
    %171 = vector.shape_cast %170 : vector<1x1x32xf32> to vector<1x32xf32>
    %172 = vector.broadcast %171 : vector<1x32xf32> to vector<8x32xf32>
    %173 = arith.addf %169, %172 : vector<8x32xf32>
    %c1_92 = arith.constant 1 : index
    %c0_93 = arith.constant 0 : index
    %c0_94 = arith.constant 0 : index
    %174 = vector.load %arg9[%c1_92, %c0_93, %c0_94] : memref<2x1x32xf32, #tpu.memory_space<vmem>>, vector<1x1x32xf32>
    %175 = vector.shape_cast %174 : vector<1x1x32xf32> to vector<1x32xf32>
    %c1_95 = arith.constant 1 : index
    %c0_96 = arith.constant 0 : index
    %c0_97 = arith.constant 0 : index
    %176 = vector.load %arg10[%c1_95, %c0_96, %c0_97] : memref<2x1x32xf32, #tpu.memory_space<vmem>>, vector<1x1x32xf32>
    %177 = vector.shape_cast %176 : vector<1x1x32xf32> to vector<1x32xf32>
    %cst_98 = arith.constant dense<0.000000e+00> : vector<8xf32>
    %178 = vector.multi_reduction <add>, %173, %cst_98 [1] : vector<8x32xf32> to vector<8xf32>
    %179 = vector.shape_cast %178 : vector<8xf32> to vector<8x1xf32>
    %cst_99 = arith.constant 3.200000e+01 : f32
    %180 = vector.broadcast %cst_99 : f32 to vector<8x1xf32>
    %181 = arith.divf %179, %180 : vector<8x1xf32>
    %182 = vector.broadcast %181 : vector<8x1xf32> to vector<8x32xf32>
    %183 = arith.subf %173, %182 : vector<8x32xf32>
    %184 = arith.mulf %183, %183 : vector<8x32xf32>
    %cst_100 = arith.constant dense<0.000000e+00> : vector<8xf32>
    %185 = vector.multi_reduction <add>, %184, %cst_100 [1] : vector<8x32xf32> to vector<8xf32>
    %186 = vector.shape_cast %185 : vector<8xf32> to vector<8x1xf32>
    %cst_101 = arith.constant 3.200000e+01 : f32
    %187 = vector.broadcast %cst_101 : f32 to vector<8x1xf32>
    %188 = arith.divf %186, %187 : vector<8x1xf32>
    %189 = vector.broadcast %181 : vector<8x1xf32> to vector<8x32xf32>
    %190 = arith.subf %173, %189 : vector<8x32xf32>
    %cst_102 = arith.constant 9.99999974E-6 : f32
    %191 = vector.broadcast %cst_102 : f32 to vector<8x1xf32>
    %192 = arith.addf %188, %191 : vector<8x1xf32>
    %193 = math.rsqrt %192 : vector<8x1xf32>
    %194 = vector.broadcast %193 : vector<8x1xf32> to vector<8x32xf32>
    %195 = arith.mulf %190, %194 : vector<8x32xf32>
    %196 = vector.broadcast %175 : vector<1x32xf32> to vector<8x32xf32>
    %197 = arith.mulf %195, %196 : vector<8x32xf32>
    %198 = vector.broadcast %177 : vector<1x32xf32> to vector<8x32xf32>
    %199 = arith.addf %197, %198 : vector<8x32xf32>
    %c1_103 = arith.constant 1 : index
    %c0_104 = arith.constant 0 : index
    %c0_105 = arith.constant 0 : index
    %200 = vector.load %arg11[%c1_103, %c0_104, %c0_105] : memref<2x32x128xf32, #tpu.memory_space<vmem>>, vector<1x32x128xf32>
    %201 = vector.shape_cast %200 : vector<1x32x128xf32> to vector<32x128xf32>
    %cst_106 = arith.constant dense<0.000000e+00> : vector<8x128xf32>
    %202 = tpu.matmul %199, %201, %cst_106 {dimension_numbers = #tpu.dot_dimension_numbers<[1], [0], [0], [1], [0, 0, 1, 1], [], []>} : vector<8x32xf32>, vector<32x128xf32>, vector<8x128xf32> -> vector<8x128xf32>
    %c1_107 = arith.constant 1 : index
    %c0_108 = arith.constant 0 : index
    %c0_109 = arith.constant 0 : index
    %203 = vector.load %arg12[%c1_107, %c0_108, %c0_109] : memref<2x1x128xf32, #tpu.memory_space<vmem>>, vector<1x1x128xf32>
    %204 = vector.shape_cast %203 : vector<1x1x128xf32> to vector<1x128xf32>
    %205 = vector.broadcast %204 : vector<1x128xf32> to vector<8x128xf32>
    %206 = arith.addf %202, %205 : vector<8x128xf32>
    %cst_110 = arith.constant 0.000000e+00 : f32
    %207 = vector.broadcast %cst_110 : f32 to vector<8x128xf32>
    %208 = arith.maximumf %206, %207 : vector<8x128xf32>
    %c1_111 = arith.constant 1 : index
    %c0_112 = arith.constant 0 : index
    %c0_113 = arith.constant 0 : index
    %209 = vector.load %arg13[%c1_111, %c0_112, %c0_113] : memref<2x128x32xf32, #tpu.memory_space<vmem>>, vector<1x128x32xf32>
    %210 = vector.shape_cast %209 : vector<1x128x32xf32> to vector<128x32xf32>
    %cst_114 = arith.constant dense<0.000000e+00> : vector<8x32xf32>
    %211 = tpu.matmul %208, %210, %cst_114 {dimension_numbers = #tpu.dot_dimension_numbers<[1], [0], [0], [1], [0, 0, 1, 1], [], []>} : vector<8x128xf32>, vector<128x32xf32>, vector<8x32xf32> -> vector<8x32xf32>
    %212 = arith.addf %173, %211 : vector<8x32xf32>
    %c1_115 = arith.constant 1 : index
    %c0_116 = arith.constant 0 : index
    %c0_117 = arith.constant 0 : index
    %213 = vector.load %arg14[%c1_115, %c0_116, %c0_117] : memref<2x1x32xf32, #tpu.memory_space<vmem>>, vector<1x1x32xf32>
    %214 = vector.shape_cast %213 : vector<1x1x32xf32> to vector<1x32xf32>
    %215 = vector.broadcast %214 : vector<1x32xf32> to vector<8x32xf32>
    %216 = arith.addf %212, %215 : vector<8x32xf32>
    %c0_118 = arith.constant 0 : index
    %c0_119 = arith.constant 0 : index
    %217 = vector.load %arg15[%c0_118, %c0_119] : memref<1x32xf32, #tpu.memory_space<vmem>>, vector<1x32xf32>
    %c0_120 = arith.constant 0 : index
    %c0_121 = arith.constant 0 : index
    %218 = vector.load %arg16[%c0_120, %c0_121] : memref<1x32xf32, #tpu.memory_space<vmem>>, vector<1x32xf32>
    %cst_122 = arith.constant dense<0.000000e+00> : vector<8xf32>
    %219 = vector.multi_reduction <add>, %216, %cst_122 [1] : vector<8x32xf32> to vector<8xf32>
    %220 = vector.shape_cast %219 : vector<8xf32> to vector<8x1xf32>
    %cst_123 = arith.constant 3.200000e+01 : f32
    %221 = vector.broadcast %cst_123 : f32 to vector<8x1xf32>
    %222 = arith.divf %220, %221 : vector<8x1xf32>
    %223 = vector.broadcast %222 : vector<8x1xf32> to vector<8x32xf32>
    %224 = arith.subf %216, %223 : vector<8x32xf32>
    %225 = arith.mulf %224, %224 : vector<8x32xf32>
    %cst_124 = arith.constant dense<0.000000e+00> : vector<8xf32>
    %226 = vector.multi_reduction <add>, %225, %cst_124 [1] : vector<8x32xf32> to vector<8xf32>
    %227 = vector.shape_cast %226 : vector<8xf32> to vector<8x1xf32>
    %cst_125 = arith.constant 3.200000e+01 : f32
    %228 = vector.broadcast %cst_125 : f32 to vector<8x1xf32>
    %229 = arith.divf %227, %228 : vector<8x1xf32>
    %230 = vector.broadcast %222 : vector<8x1xf32> to vector<8x32xf32>
    %231 = arith.subf %216, %230 : vector<8x32xf32>
    %cst_126 = arith.constant 9.99999974E-6 : f32
    %232 = vector.broadcast %cst_126 : f32 to vector<8x1xf32>
    %233 = arith.addf %229, %232 : vector<8x1xf32>
    %234 = math.rsqrt %233 : vector<8x1xf32>
    %235 = vector.broadcast %234 : vector<8x1xf32> to vector<8x32xf32>
    %236 = arith.mulf %231, %235 : vector<8x32xf32>
    %237 = vector.broadcast %217 : vector<1x32xf32> to vector<8x32xf32>
    %238 = arith.mulf %236, %237 : vector<8x32xf32>
    %239 = vector.broadcast %218 : vector<1x32xf32> to vector<8x32xf32>
    %240 = arith.addf %238, %239 : vector<8x32xf32>
    %c0_127 = arith.constant 0 : index
    %c0_128 = arith.constant 0 : index
    %241 = vector.load %arg17[%c0_127, %c0_128] : memref<32x128xf32, #tpu.memory_space<vmem>>, vector<32x128xf32>
    %cst_129 = arith.constant dense<0.000000e+00> : vector<8x128xf32>
    %242 = tpu.matmul %240, %241, %cst_129 {dimension_numbers = #tpu.dot_dimension_numbers<[1], [0], [0], [1], [0, 0, 1, 1], [], []>} : vector<8x32xf32>, vector<32x128xf32>, vector<8x128xf32> -> vector<8x128xf32>
    %c0_130 = arith.constant 0 : index
    %c0_131 = arith.constant 0 : index
    %243 = vector.load %arg18[%c0_130, %c0_131] : memref<1x128xf32, #tpu.memory_space<vmem>>, vector<1x128xf32>
    %244 = vector.broadcast %243 : vector<1x128xf32> to vector<8x128xf32>
    %245 = arith.addf %242, %244 : vector<8x128xf32>
    %c0_132 = arith.constant 0 : index
    %c0_133 = arith.constant 0 : index
    %246 = vector.load %arg19[%c0_132, %c0_133] : memref<8x128xf32, #tpu.memory_space<vmem>>, vector<8x128xf32>
    tpu.vector_store %arg19[%c0_132, %c0_133], %245 {strides = array<i32>} : memref<8x128xf32, #tpu.memory_space<vmem>>, vector<8x128xf32>,
    return
  }
  func.func @transform_0(%arg0: i32) -> (i32, i32) {
    %c0_i32 = arith.constant 0 : i32
    %c0_i32_0 = arith.constant 0 : i32
    return %arg0, %c0_i32 : i32, i32
  }
  func.func @transform_1(%arg0: i32) -> (i32, i32) {
    %c0_i32 = arith.constant 0 : i32
    %c0_i32_0 = arith.constant 0 : i32
    %c0_i32_1 = arith.constant 0 : i32
    return %c0_i32, %c0_i32_0 : i32, i32
  }
  func.func @transform_2(%arg0: i32) -> (i32, i32) {
    %c0_i32 = arith.constant 0 : i32
    %c0_i32_0 = arith.constant 0 : i32
    %c0_i32_1 = arith.constant 0 : i32
    return %c0_i32, %c0_i32_0 : i32, i32
  }
  func.func @transform_3(%arg0: i32) -> (i32, i32, i32) {
    %c0_i32 = arith.constant 0 : i32
    %c0_i32_0 = arith.constant 0 : i32
    %c0_i32_1 = arith.constant 0 : i32
    %c0_i32_2 = arith.constant 0 : i32
    return %c0_i32, %c0_i32_0, %c0_i32_1 : i32, i32, i32
  }
  func.func @transform_4(%arg0: i32) -> (i32, i32, i32) {
    %c0_i32 = arith.constant 0 : i32
    %c0_i32_0 = arith.constant 0 : i32
    %c0_i32_1 = arith.constant 0 : i32
    %c0_i32_2 = arith.constant 0 : i32
    return %c0_i32, %c0_i32_0, %c0_i32_1 : i32, i32, i32
  }
  func.func @transform_5(%arg0: i32) -> (i32, i32, i32, i32) {
    %c0_i32 = arith.constant 0 : i32
    %c0_i32_0 = arith.constant 0 : i32
    %c0_i32_1 = arith.constant 0 : i32
    %c0_i32_2 = arith.constant 0 : i32
    %c0_i32_3 = arith.constant 0 : i32
    return %c0_i32, %c0_i32_0, %c0_i32_1, %c0_i32_2 : i32, i32, i32, i32
  }
  func.func @transform_6(%arg0: i32) -> (i32, i32, i32, i32) {
    %c0_i32 = arith.constant 0 : i32
    %c0_i32_0 = arith.constant 0 : i32
    %c0_i32_1 = arith.constant 0 : i32
    %c0_i32_2 = arith.constant 0 : i32
    %c0_i32_3 = arith.constant 0 : i32
    return %c0_i32, %c0_i32_0, %c0_i32_1, %c0_i32_2 : i32, i32, i32, i32
  }
  func.func @transform_7(%arg0: i32) -> (i32, i32, i32) {
    %c0_i32 = arith.constant 0 : i32
    %c0_i32_0 = arith.constant 0 : i32
    %c0_i32_1 = arith.constant 0 : i32
    %c0_i32_2 = arith.constant 0 : i32
    return %c0_i32, %c0_i32_0, %c0_i32_1 : i32, i32, i32
  }
  func.func @transform_8(%arg0: i32) -> (i32, i32, i32) {
    %c0_i32 = arith.constant 0 : i32
    %c0_i32_0 = arith.constant 0 : i32
    %c0_i32_1 = arith.constant 0 : i32
    %c0_i32_2 = arith.constant 0 : i32
    return %c0_i32, %c0_i32_0, %c0_i32_1 : i32, i32, i32
  }
  func.func @transform_9(%arg0: i32) -> (i32, i32, i32) {
    %c0_i32 = arith.constant 0 : i32
    %c0_i32_0 = arith.constant 0 : i32
    %c0_i32_1 = arith.constant 0 : i32
    %c0_i32_2 = arith.constant 0 : i32
    return %c0_i32, %c0_i32_0, %c0_i32_1 : i32, i32, i32
  }
  func.func @transform_10(%arg0: i32) -> (i32, i32, i32) {
    %c0_i32 = arith.constant 0 : i32
    %c0_i32_0 = arith.constant 0 : i32
    %c0_i32_1 = arith.constant 0 : i32
    %c0_i32_2 = arith.constant 0 : i32
    return %c0_i32, %c0_i32_0, %c0_i32_1 : i32, i32, i32
  }
  func.func @transform_11(%arg0: i32) -> (i32, i32, i32) {
    %c0_i32 = arith.constant 0 : i32
    %c0_i32_0 = arith.constant 0 : i32
    %c0_i32_1 = arith.constant 0 : i32
    %c0_i32_2 = arith.constant 0 : i32
    return %c0_i32, %c0_i32_0, %c0_i32_1 : i32, i32, i32
  }
  func.func @transform_12(%arg0: i32) -> (i32, i32, i32) {
    %c0_i32 = arith.constant 0 : i32
    %c0_i32_0 = arith.constant 0 : i32
    %c0_i32_1 = arith.constant 0 : i32
    %c0_i32_2 = arith.constant 0 : i32
    return %c0_i32, %c0_i32_0, %c0_i32_1 : i32, i32, i32
  }
  func.func @transform_13(%arg0: i32) -> (i32, i32, i32) {
    %c0_i32 = arith.constant 0 : i32
    %c0_i32_0 = arith.constant 0 : i32
    %c0_i32_1 = arith.constant 0 : i32
    %c0_i32_2 = arith.constant 0 : i32
    return %c0_i32, %c0_i32_0, %c0_i32_1 : i32, i32, i32
  }
  func.func @transform_14(%arg0: i32) -> (i32, i32) {
    %c0_i32 = arith.constant 0 : i32
    %c0_i32_0 = arith.constant 0 : i32
    %c0_i32_1 = arith.constant 0 : i32
    return %c0_i32, %c0_i32_0 : i32, i32
  }
  func.func @transform_15(%arg0: i32) -> (i32, i32) {
    %c0_i32 = arith.constant 0 : i32
    %c0_i32_0 = arith.constant 0 : i32
    %c0_i32_1 = arith.constant 0 : i32
    return %c0_i32, %c0_i32_0 : i32, i32
  }
  func.func @transform_16(%arg0: i32) -> (i32, i32) {
    %c0_i32 = arith.constant 0 : i32
    %c0_i32_0 = arith.constant 0 : i32
    %c0_i32_1 = arith.constant 0 : i32
    return %c0_i32, %c0_i32_0 : i32, i32
  }
  func.func @transform_17(%arg0: i32) -> (i32, i32) {
    %c0_i32 = arith.constant 0 : i32
    %c0_i32_0 = arith.constant 0 : i32
    %c0_i32_1 = arith.constant 0 : i32
    return %c0_i32, %c0_i32_0 : i32, i32
  }
  func.func @transform_18(%arg0: i32) -> (i32, i32) {
    %c0_i32 = arith.constant 0 : i32
    %c0_i32_0 = arith.constant 0 : i32
    return %arg0, %c0_i32 : i32, i32
  }
}

</mosaic_0001>

<bundles_post_ra>
// kernel: bigram_lm_forward.1
= control target key start
LH: loop header
LB: loop body
LE: loop exit
PB: predicated region body
PF: predicated region fallthrough
CT: control target
= control target key end

     0   :  { %s2653_s27 = smov 0   ;;  %s3360_s0 = inlined_call_operand.vmem [shape: s32[16,1], index: 0, kind: input, shape index: {}]   ;;  %s3361_s1 = inlined_call_operand.vmem [shape: f32[8,32], index: 1, kind: input, shape index: {}]   ;;  %s3362_s2 = inlined_call_operand.vmem [shape: f32[64,32], index: 2, kind: input, shape index: {}]   ;;  %s3363_s3 = inlined_call_operand.vmem [shape: f32[2,1,32], index: 3, kind: input, shape index: {}]   ;;  %s3364_s4 = inlined_call_operand.vmem [shape: f32[2,1,32], index: 4, kind: input, shape index: {}]   ;;  %s3365_s5 = inlined_call_operand.vmem [shape: f32[2,12,32,8], index: 5, kind: input, shape index: {}]   ;;  %s3366_s6 = inlined_call_operand.vmem [shape: f32[2,4,8,32], index: 6, kind: input, shape index: {}]   ;;  %s3367_s7 = inlined_call_operand.vmem [shape: f32[2,1,32], index: 7, kind: input, shape index: {}]   ;;  %s3368_s8 = inlined_call_operand.vmem [shape: f32[2,1,32], index: 8, kind: input, shape index: {}]   ;;  %s3369_s9 = inlined_call_operand.vmem [shape: f32[2,1,32], index: 9, kind: input, shape index: {}]   ;;  %s3370_s10 = inlined_call_operand.vmem [shape: f32[2,32,128], index: 10, kind: input, shape index: {}]   ;;  %s3371_s11 = inlined_call_operand.vmem [shape: f32[2,1,128], index: 11, kind: input, shape index: {}]   ;;  %s3372_s12 = inlined_call_operand.vmem [shape: f32[2,128,32], index: 12, kind: input, shape index: {}]   ;;  %s3373_s13 = inlined_call_operand.vmem [shape: f32[2,1,32], index: 13, kind: input, shape index: {}]   ;;  %s3374_s14 = inlined_call_operand.vmem [shape: f32[1,32], index: 14, kind: input, shape index: {}]   ;;  %s3375_s15 = inlined_call_operand.vmem [shape: f32[1,32], index: 15, kind: input, shape index: {}]   ;;  %s3376_s16 = inlined_call_operand.vmem [shape: f32[32,128], index: 16, kind: input, shape index: {}]   ;;  %s3377_s17 = inlined_call_operand.vmem [shape: f32[1,128], index: 17, kind: input, shape index: {}]   ;;  %s3378_s18 = inlined_call_operand.vmem [shape: f32[16,128], index: 18, kind: output, shape index: {}]  }
   0x1   :  { %3380 = sst [smem:[#allocation2_spill]] %s3360_s0 }
   0x2   :  { %3381 = sst [smem:[#allocation3_spill]] %s3361_s1 }
   0x3   :  { %3382 = sst [smem:[#allocation4_spill]] %s3362_s2 }
   0x4 LB: > { %s2325_s28 = sadd.s32 4294967295, %s2553_s27   ;;  %p2329_p0 = scmp.ge.s32.totalorder %s2553_s27, 1  ;;  %s2553_s27 = sphi %s2653_s27, %s28_s27  }
   0x5   : > { %p511_p1 = scmp.lt.s32.totalorder %s2553_s27, 3 }
   0x7   : > { %p512_p2 = pnand %p2329_p0, %p511_p1 }
   0x8   : > { %p563_p3 = scmp.lt.s32.totalorder (!%p512_p2), %s2325_s28, 1  ;;  %s3383_s0 = sld [smem:[#allocation4_spill]] (!%p512_p2) }
   0x9   : > { %515 = sbr.rel (%p512_p2) target bundleno = 3890 (0xf32), region = 92  ;;  %s3384_s30 = sld [smem:[#allocation2_spill]] (!%p512_p2) }
   0xa   : > { %s3385_s29 = sld [smem:[#allocation3_spill]] (!%p512_p2) }
   0xe   : > { %v587_v0 = vld [vmem:[%s3383_s0 + $0x38] sm:$0xff]  ;;  %v586_v1 = vld [vmem:[%s3383_s0 + $0x30] sm:$0xff]  ;;  %v2555_v2 = vmov 0   ;;  %s3389_s28 = smov (!%p563_p3, %s2325_s28), 1  ;;  %v585_v3 = vld [vmem:[%s3383_s0 + $0x28] sm:$0xff]  ;;  %v572_v10 = vlaneseq  ;;  %vm589_vm0 = vcmask 523264  }
   0xf   : > { %2485 = vset.pattern.permute.xlu0 %v2555_v2  ;;  %601 = vmatpush.msra.mxu2 %v587_v0  ;;  %v584_v4 = vld [vmem:[%s3383_s0 + $0x20] sm:$0xff]  ;;  %s2330_s23 = sshll.u32 %s3389_s28, 3  ;;  %v583_v5 = vld [vmem:[%s3383_s0 + $0x18] sm:$0xff]  ;;  %v582_v7 = vld [vmem:[%s3383_s0 + $0x10] sm:$0xff]  ;;  %v2556_v13 = vmov 0.0   ;;  %vm618_vm2 = vcmask 261120  }
  0x10   : > { %s566_s19 = scalar_lea.vmem %s3384_s30, %s2330_s23  ;;  %v581_v8 = vld [vmem:[%s3383_s0 + $0x8] sm:$0xff]  ;;  %v580_v9 = vld [vmem:[%s3383_s0] sm:$0xff]  ;;  %v2694_v11 = vand.u32 127, %v572_v10  ;;  %v2557_v19 = vmov 32.0   ;;  %v659_v31 = vld [vmem:[%s3365_s5 + $0x18] sm:$0xff]  ;;  %vm947_vm7 = vcmask 64512   ;;  %s570_s1 = scalar_lea.vmem %s3378_s18, %s2330_s23 }
  0x11   : > { %602 = vmatpush.msra.mxu2 %v586_v1  ;;  %v571_v6 = vld [vmem:[%s566_s19] sm:$0xff]  ;;  %2503 = vrcp.f32 %v2557_v19  ;;  %v663_v32 = vld [vmem:[%s3365_s5 + $0x38] sm:$0xff]  ;;  %719 = vmatpush.msra.mxu1 %v659_v31  ;;  %v658_v35 = vld [vmem:[%s3365_s5 + $0x10] sm:$0xff] }
  0x12   : > { %575 = vperm.xlu0 %2485, %v571_v6   ;;  %v588_v15 = vld [vmem:[%s3385_s29] sm:$0xff]  ;;  %v667_v33 = vld [vmem:[%s3365_s5 + $0x58] sm:$0xff]  ;;  %v662_v36 = vld [vmem:[%s3365_s5 + $0x30] sm:$0xff] }
  0x13   : > { %603 = vmatpush.msra.mxu2 %v585_v3  ;;  %v699_v34 = vld [vmem:[%s3365_s5 + $0x158] sm:$0xff]  ;;  %759 = vmatpush.msra.mxu3 %v667_v33  ;;  %v666_v37 = vld [vmem:[%s3365_s5 + $0x50] sm:$0xff]  ;;  %v657_v39 = vld [vmem:[%s3365_s5 + $0x8] sm:$0xff] }
  0x14   : > { %919 = vmatpush.msra.mxu0 %v699_v34  ;;  %720 = vmatpush.msra.mxu1 %v658_v35  ;;  %v698_v38 = vld [vmem:[%s3365_s5 + $0x150] sm:$0xff]  ;;  %v661_v40 = vld [vmem:[%s3365_s5 + $0x28] sm:$0xff]  ;;  %v656_v43 = vld [vmem:[%s3365_s5] sm:$0xff] }
  0x15   : > { %604 = vmatpush.msra.mxu2 %v584_v4  ;;  %760 = vmatpush.msra.mxu3 %v666_v37  ;;  %v665_v41 = vld [vmem:[%s3365_s5 + $0x48] sm:$0xff]  ;;  %v660_v44 = vld [vmem:[%s3365_s5 + $0x20] sm:$0xff]  ;;  %v671_v47 = vld [vmem:[%s3365_s5 + $0x78] sm:$0xff] }
  0x16   : > { %920 = vmatpush.msra.mxu0 %v698_v38  ;;  %721 = vmatpush.msra.mxu1 %v657_v39  ;;  %v697_v42 = vld [vmem:[%s3365_s5 + $0x148] sm:$0xff]  ;;  %v664_v45 = vld [vmem:[%s3365_s5 + $0x40] sm:$0xff]  ;;  %v675_v48 = vld [vmem:[%s3365_s5 + $0x98] sm:$0xff] }
  0x17   : > { %605 = vmatpush.msra.mxu2 %v583_v5  ;;  %v2504_v20 = vpop.eup %2503  ;;  %761 = vmatpush.msra.mxu3 %v665_v41  ;;  %v696_v46 = vld [vmem:[%s3365_s5 + $0x140] sm:$0xff]  ;;  %v679_v49 = vld [vmem:[%s3365_s5 + $0xb8] sm:$0xff]  ;;  %v670_v50 = vld [vmem:[%s3365_s5 + $0x70] sm:$0xff] }
  0x18   : > { %v623_v21 = vmul.f32 32.0, %v2504_v20  ;;  %vm627_vm3 = vweird.f32 %v2504_v20  ;;  %921 = vmatpush.msra.mxu0 %v697_v42  ;;  %722 = vmatpush.msra.mxu1 %v656_v43  ;;  %v674_v51 = vld [vmem:[%s3365_s5 + $0x90] sm:$0xff]  ;;  %v669_v54 = vld [vmem:[%s3365_s5 + $0x68] sm:$0xff]  ;;  %v668_v58 = vld [vmem:[%s3365_s5 + $0x60] sm:$0xff] }
  0x19   : > { %606 = vmatpush.msra.mxu2 %v582_v7  ;;  %762 = vmatpush.msra.mxu3 %v664_v45  ;;  %v678_v52 = vld [vmem:[%s3365_s5 + $0xb0] sm:$0xff]  ;;  %v673_v55 = vld [vmem:[%s3365_s5 + $0x88] sm:$0xff]  ;;  %v672_v59 = vld [vmem:[%s3365_s5 + $0x80] sm:$0xff] }
  0x1a   : > { %v624_v22 = vsub.f32 1.0, %v623_v21  ;;  %922 = vmatpush.msra.mxu0 %v696_v46  ;;  %779 = vmatpush.msrb.mxu1 %v671_v47  ;;  %v677_v57 = vld [vmem:[%s3365_s5 + $0xa8] sm:$0xff]  ;;  %v676_v61 = vld [vmem:[%s3365_s5 + $0xa0] sm:$0xff]  ;;  %v614_v46 = vshrl.u32 %v572_v10, 7 }
  0x1b   : > { %607 = vmatpush.msra.mxu2 %v581_v8  ;;  %819 = vmatpush.msrb.mxu3 %v679_v49  ;;  %v2486_v4 = vld [vmem:[%s3363_s3] ss:$0 sm:$0xff]  ;;  %v681_v19 = vld [vmem:[%s3365_s5 + $0xc8] sm:$0xff] }
  0x1c   : > { %v625_v23 = vmul.f32 %v2504_v20, %v624_v22  ;;  %780 = vmatpush.msrb.mxu1 %v670_v50  ;;  %v2487_v6 = vld [vmem:[%s3364_s4] ss:$0 sm:$0xff]  ;;  %v689_v21 = vld [vmem:[%s3365_s5 + $0x108] sm:$0xff]  ;;  %vm2887_vm8 = vcmp.ge.s32.totalorder %v614_v46, %v2694_v11 }
  0x1d   : > { %608 = vmatpush.msra.mxu2 %v580_v9  ;;  %820 = vmatpush.msrb.mxu3 %v678_v52  ;;  %v684_v22 = vld [vmem:[%s3365_s5 + $0xe0] sm:$0xff]  ;;  %v701_v31 = vld [vmem:[%s3365_s5 + $0x168] sm:$0xff] }
  0x1e   : > { %v626_v24 = vadd.f32 %v2504_v20, %v625_v23  ;;  %781 = vmatpush.msrb.mxu1 %v669_v54  ;;  %v680_v23 = vld [vmem:[%s3365_s5 + $0xc0] sm:$0xff] }
  0x1f   : > { %739 = vmatpush.msrb.mxu2 %v663_v32  ;;  %821 = vmatpush.msrb.mxu3 %v677_v57  ;;  %v700_v32 = vld [vmem:[%s3365_s5 + $0x160] sm:$0xff] }
  0x20   : > { %v2704_v25 = vsel %vm627_vm3, %v2504_v20, %v626_v24  ;;  %782 = vmatpush.msrb.mxu1 %v668_v58  ;;  %v685_v20 = vld [vmem:[%s3365_s5 + $0xe8] sm:$0xff]  ;;  %v688_v24 = vld [vmem:[%s3365_s5 + $0x100] sm:$0xff] }
  0x21   : > { %740 = vmatpush.msrb.mxu2 %v662_v36  ;;  %822 = vmatpush.msrb.mxu3 %v676_v61  ;;  %v692_v33 = vld [vmem:[%s3365_s5 + $0x120] sm:$0xff] }
  0x23   : > { %741 = vmatpush.msrb.mxu2 %v661_v40 }
  0x25   : > { %742 = vmatpush.msrb.mxu2 %v660_v44 }
  0x84   : > { %v576_v12 = vpop.permute.xlu0 %575 }
  0x85   : > { %vm577_vm1 = vcmp.eq.s32.totalorder %v2694_v11, %v576_v12  ;;  %v683_v12 = vld [vmem:[%s3365_s5 + $0xd8] sm:$0xff] }
  0x86   : > { %v2332_v14 = vsel %vm577_vm1, 1.0, %v2556_v13  ;;  %v687_v13 = vld [vmem:[%s3365_s5 + $0xf8] sm:$0xff] }
  0x87   : > { %2333 = vmatmul.msk.f32.vlgmr.msra.gmra.mxu2 %vm589_vm0, %v2332_v14  ;;  %v691_v14 = vld [vmem:[%s3365_s5 + $0x118] sm:$0xff] }
  0x88   : > { %799 = vmatpush.msra.mxu2 %v675_v48 }
  0x8a   : > { %800 = vmatpush.msra.mxu2 %v674_v51 }
  0x8c   : > { %801 = vmatpush.msra.mxu2 %v673_v55 }
  0x8e   : > { %802 = vmatpush.msra.mxu2 %v672_v59 }
 0x10a   : > { %v610_v16 = vpop.f32.mrf.mxu2 }
 0x10b   : > { %v2700_v17 = vadd.f32 %v610_v16, %v588_v15  ;;  %v682_v15 = vld [vmem:[%s3365_s5 + $0xd0] sm:$0xff] }
 0x10c   : > { %v686_v16 = vld [vmem:[%s3365_s5 + $0xf0] sm:$0xff] }
 0x10d   : > { %v619_v18 = vsel %vm618_vm2, %v2700_v17, 0.0 }
 0x10e   : > { %620 = vadd.xlane.f32.xlu0 %v619_v18  ;;  %v690_v18 = vld [vmem:[%s3365_s5 + $0x110] sm:$0xff] }
 0x181   : > { %v621_v26 = vpop.xlane.xlu0 %620 }
 0x182   : > { %v629_v27 = vmul.f32 %v2704_v25, %v621_v26  ;;  %v695_v26 = vld [vmem:[%s3365_s5 + $0x138] sm:$0xff] }
 0x184   : > { %v2708_v28 = vsub.f32 %v2700_v17, %v629_v27  ;;  %v703_v27 = vld [vmem:[%s3365_s5 + $0x178] sm:$0xff] }
 0x186   : > { %v631_v29 = vmul.f32 %v2708_v28, %v2708_v28 }
 0x188   : > { %v632_v30 = vsel %vm618_vm2, %v631_v29, 0.0  ;;  %v702_v29 = vld [vmem:[%s3365_s5 + $0x170] sm:$0xff] }
 0x189   : > { %633 = vadd.xlane.f32.xlu1 %v632_v30  ;;  %v693_v30 = vld [vmem:[%s3365_s5 + $0x128] sm:$0xff] }
 0x1fc   : > { %v634_v53 = vpop.xlane.xlu1 %633 }
 0x1fd   : > { %v635_v56 = vmul.f32 %v634_v53, %v2704_v25 }
 0x1ff   : > { %v636_v60 = vadd.f32 1e-05, %v635_v56 }
 0x201   : > { %2505 = vrsqrt.f32 %v636_v60  ;;  %vm643_vm5 = vweird.f32 %v636_v60 }
 0x207   : > { %v2506_v62 = vpop.eup %2505 }
 0x208   : > { %v638_v63 = vmul.f32 %v2506_v62, %v636_v60  ;;  %vm644_vm4 = vweird.f32 %v2506_v62 }
 0x209   : > { %vm645_vm6 = vmor %vm643_vm5, %vm644_vm4 }
 0x20a   : > { %v639_v0 = vmul.f32 %v2506_v62, %v638_v63 }
 0x20c   : > { %v640_v1 = vmul.f32 0.5, %v639_v0 }
 0x20e   : > { %v641_v2 = vsub.f32 1.5, %v640_v1 }
 0x210   : > { %v642_v3 = vmul.f32 %v2506_v62, %v641_v2 }
 0x212   : > { %v646_v5 = vsel %vm645_vm6, %v2506_v62, %v642_v3 }
 0x213   : > { %v647_v7 = vmul.f32 %v646_v5, %v2708_v28  ;;  %v694_v28 = vld [vmem:[%s3365_s5 + $0x130] sm:$0xff] }
 0x215   : > { %v651_v8 = vmul.f32 %v2486_v4, %v647_v7 }
 0x217   : > { %v655_v9 = vadd.f32 %v2487_v6, %v651_v8 }
 0x219   : > { %2334 = vmatmul.msk.f32.vlgmr.msra.gmra.mxu1 %vm618_vm2, %v655_v9  ;;  %2335 = vmatmul.msk.f32.vlgmr.msrb.gmra.mxu2 %vm618_vm2, %v655_v9 }
 0x21a   : > { %2336 = vmatmul.msk.f32.vlgmr.msra.gmra.mxu3 %vm618_vm2, %v655_v9  ;;  %2344 = vmatmul.msk.f32.vlgmr.msra.gmra.mxu0 %vm618_vm2, %v655_v9 }
 0x21b   : > { %839 = vmatpush.msra.mxu3 %v683_v12  ;;  %859 = vmatpush.msra.mxu1 %v687_v13 }
 0x21c   : > { %879 = vmatpush.msrb.mxu2 %v691_v14 }
 0x21d   : > { %840 = vmatpush.msra.mxu3 %v682_v15  ;;  %860 = vmatpush.msra.mxu1 %v686_v16 }
 0x21e   : > { %880 = vmatpush.msrb.mxu2 %v690_v18 }
 0x21f   : > { %841 = vmatpush.msra.mxu3 %v681_v19  ;;  %861 = vmatpush.msra.mxu1 %v685_v20 }
 0x220   : > { %881 = vmatpush.msrb.mxu2 %v689_v21  ;;  %v1196_v21 = vld [vmem:[%s3366_s6] sm:$0xff] }
 0x221   : > { %2337 = vmatmul.msk.f32.vlgmr.msrb.gmra.mxu1 %vm618_vm2, %v655_v9  ;;  %2338 = vmatmul.msk.f32.vlgmr.msra.gmra.mxu2 %vm618_vm2, %v655_v9 }
 0x222   : > { %2339 = vmatmul.msk.f32.vlgmr.msrb.gmra.mxu3 %vm618_vm2, %v655_v9  ;;  %862 = vmatpush.msra.mxu1 %v684_v22  ;;  %v1197_v22 = vld [vmem:[%s3366_s6 + $0x8] sm:$0xff] }
 0x223   : > { %842 = vmatpush.msra.mxu3 %v680_v23  ;;  %882 = vmatpush.msrb.mxu2 %v688_v24 }
 0x224   : > { %939 = vmatpush.msrb.mxu1 %v703_v27 }
 0x225   : > { %899 = vmatpush.msrb.mxu3 %v695_v26 }
 0x226   : > { %940 = vmatpush.msrb.mxu1 %v702_v29 }
 0x227   : > { %900 = vmatpush.msrb.mxu3 %v694_v28 }
 0x228   : > { %941 = vmatpush.msrb.mxu1 %v701_v31 }
 0x229   : > { %901 = vmatpush.msrb.mxu3 %v693_v30  ;;  %2341 = vmatmul.msk.f32.vlgmr.msra.gmra.mxu1 %vm618_vm2, %v655_v9 }
 0x22a   : > { %2342 = vmatmul.msk.f32.vlgmr.msrb.gmra.mxu2 %vm618_vm2, %v655_v9  ;;  %2340 = vmatmul.msk.f32.vlgmr.msra.gmra.mxu3 %vm618_vm2, %v655_v9 }
 0x22b   : > { %942 = vmatpush.msrb.mxu1 %v700_v32  ;;  %902 = vmatpush.msrb.mxu3 %v692_v33 }
 0x231   : > { %2345 = vmatmul.msk.f32.vlgmr.msrb.gmra.mxu1 %vm618_vm2, %v655_v9 }
 0x232   : > { %2343 = vmatmul.msk.f32.vlgmr.msrb.gmra.mxu3 %vm618_vm2, %v655_v9 }
 0x296   : > { %v724_v34 = vpop.f32.mrf.mxu1 }
 0x297   : > { %v924_v43 = vpop.f32.mrf.mxu0 }
 0x29c   : > { %v744_v35 = vpop.f32.mrf.mxu2 }
 0x29d   : > { %v764_v36 = vpop.f32.mrf.mxu3 }
 0x29e   : > { %v784_v37 = vpop.f32.mrf.mxu1 }
 0x2a4   : > { %v804_v38 = vpop.f32.mrf.mxu2 }
 0x2a5   : > { %v824_v39 = vpop.f32.mrf.mxu3  ;;  %2346 = vmatpush.xpose.msk.msra.mxu2 %vm947_vm7, %v804_v38 }
 0x2a6   : > { %2348 = vmatpush.xpose.msk.msra.mxu3 %vm947_vm7, %v824_v39  ;;  %v864_v40 = vpop.f32.mrf.mxu1 }
 0x2a7   : > { %2352 = vmatpush.xpose.msk.msra.mxu1 %vm947_vm7, %v864_v40 }
 0x2a8   : > { %2347 = vmatmul.msk.f32.vlgmr.msra.gmra.mxu2 %vm947_vm7, %v724_v34 }
 0x2a9   : > { %2349 = vmatmul.msk.f32.vlgmr.msra.gmra.mxu3 %vm947_vm7, %v744_v35 }
 0x2aa   : > { %2353 = vmatmul.msk.f32.vlgmr.msra.gmra.mxu1 %vm947_vm7, %v784_v37  ;;  %v1199_v37 = vld [vmem:[%s3366_s6 + $0x18] sm:$0xff] }
 0x2ad   : > { %v884_v41 = vpop.f32.mrf.mxu2  ;;  %v844_v42 = vpop.f32.mrf.mxu3 }
 0x2ae   : > { %1122 = vmatpush.msrb.mxu2 %v884_v41  ;;  %2350 = vmatpush.xpose.msk.msrb.mxu0 %vm947_vm7, %v844_v42  ;;  %v944_v44 = vpop.f32.mrf.mxu1 }
 0x2af   : > { %1191 = vmatpush.msrb.mxu1 %v944_v44 }
 0x2b0   : > { %1218 = vmatpush.msra.mxu2 %v1196_v21  ;;  %v1373_v21 = vld [vmem:[%s3372_s12 + $0x20] sm:$0xff] }
 0x2b1   : > { %2351 = vmatmul.msk.f32.vlgmr.msrb.gmra.mxu0 %vm947_vm7, %v764_v36  ;;  %v1198_v36 = vld [vmem:[%s3366_s6 + $0x10] sm:$0xff]  ;;  %1287 = vmatpush.msra.mxu1 %v1199_v37 }
 0x2b2   : > { %1168 = vmatpush.msra.mxu0 %v924_v43 }
 0x2b4   : > { %1264 = vmatpush.msrb.mxu0 %v1198_v36 }
 0x2b5   : > { %v904_v45 = vpop.f32.mrf.mxu3 }
 0x2b6   : > { %1145 = vmatpush.msrb.mxu3 %v904_v45 }
 0x2b8   : > { %1241 = vmatpush.msra.mxu3 %v1197_v22 }
 0x327   : > { %v1049_v51 = vpop.f32.mrf.mxu1 }
 0x328   : > { %v1055_v10 = vmul.f32 0.17677669, %v1049_v51 }
 0x32a   : > { %v1059_v11 = vsel %vm2887_vm8, %v1055_v10, -1e+30 }
 0x32b   : > { %v971_v47 = vpop.f32.mrf.mxu2  ;;  %v1069_v60 = vsel %vm947_vm7, %v1059_v11, -inf }
 0x32c   : > { %v1052_v48 = vmul.f32 0.17677669, %v971_v47  ;;  %v997_v49 = vpop.f32.mrf.mxu3 }
 0x32d   : > { %v1053_v52 = vmul.f32 0.17677669, %v997_v49 }
 0x32e   : > { %v1023_v53 = vpop.f32.mrf.mxu0  ;;  %v1056_v54 = vsel %vm2887_vm8, %v1052_v48, -1e+30 }
 0x32f   : > { %v1057_v55 = vsel %vm2887_vm8, %v1053_v52, -1e+30  ;;  %v1060_v56 = vsel %vm947_vm7, %v1056_v54, -inf  ;;  %v1054_v58 = vmul.f32 0.17677669, %v1023_v53 }
 0x330   : > { %v1063_v57 = vsel %vm947_vm7, %v1057_v55, -inf  ;;  %1061 = vmax.xlane.f32.xlu1 %v1060_v56 }
 0x331   : > { %1064 = vmax.xlane.f32.xlu2 %v1063_v57  ;;  %v1058_v59 = vsel %vm2887_vm8, %v1054_v58, -1e+30 }
 0x332   : > { %v1066_v61 = vsel %vm947_vm7, %v1058_v59, -inf }
 0x338   : > { %1070 = vmax.xlane.f32.xlu1 %v1069_v60 }
 0x339   : > { %1067 = vmax.xlane.f32.xlu2 %v1066_v61  ;;  %v1340_v61 = vld [vmem:[%s3370_s10 + $0x18] sm:$0xff] }
 0x3a3   : > { %v1062_v62 = vpop.xlane.xlu1 %1061 }
 0x3a4   : > { %v1065_v63 = vpop.xlane.xlu2 %1064  ;;  %v1072_v0 = vsub.f32 %v1056_v54, %v1062_v62  ;;  %v2488_v54 = vld [vmem:[%s3367_s7] ss:$0 sm:$0xff]  ;;  %v1338_v62 = vld [vmem:[%s3370_s10 + $0x8] sm:$0xff] }
 0x3a5   : > { %v1073_v1 = vsub.f32 %v1057_v55, %v1065_v63  ;;  %v1337_v63 = vld [vmem:[%s3370_s10] sm:$0xff] }
 0x3a6   : > { %v1076_v2 = vmul.f32 1.442695, %v1072_v0  ;;  %v1384_v0 = vld [vmem:[%s3372_s12 + $0x78] sm:$0xff] }
 0x3a7   : > { %v1078_v3 = vmul.f32 1.442695, %v1073_v1  ;;  %v1383_v1 = vld [vmem:[%s3372_s12 + $0x70] sm:$0xff] }
 0x3a8   : > { %2507 = vpow2.f32 %v1076_v2  ;;  %v1382_v2 = vld [vmem:[%s3372_s12 + $0x68] sm:$0xff] }
 0x3a9   : > { %2509 = vpow2.f32 %v1078_v3 }
 0x3ab   : > { %v1071_v4 = vpop.xlane.xlu1 %1070 }
 0x3ac   : > { %v1068_v5 = vpop.xlane.xlu2 %1067  ;;  %v1075_v6 = vsub.f32 %v1059_v11, %v1071_v4 }
 0x3ad   : > { %v1074_v7 = vsub.f32 %v1058_v59, %v1068_v5  ;;  %v1381_v5 = vld [vmem:[%s3372_s12 + $0x60] sm:$0xff] }
 0x3ae   : > { %v2508_v8 = vpop.eup %2507  ;;  %v1082_v9 = vmul.f32 1.442695, %v1075_v6 }
 0x3af   : > { %v2510_v12 = vpop.eup %2509  ;;  %v1080_v13 = vmul.f32 1.442695, %v1074_v7  ;;  %v1084_v14 = vsel %vm947_vm7, %v2508_v8, 0.0  ;;  %v1380_v7 = vld [vmem:[%s3372_s12 + $0x58] sm:$0xff] }
 0x3b0   : > { %2511 = vpow2.f32 %v1082_v9  ;;  %1085 = vadd.xlane.f32.xlu2 %v1084_v14  ;;  %v1087_v15 = vsel %vm947_vm7, %v2510_v12, 0.0  ;;  %v1378_v9 = vld [vmem:[%s3372_s12 + $0x48] sm:$0xff]  ;;  %v1376_v14 = vld [vmem:[%s3372_s12 + $0x38] sm:$0xff] }
 0x3b1   : > { %2513 = vpow2.f32 %v1080_v13  ;;  %1088 = vadd.xlane.f32.xlu1 %v1087_v15 }
 0x3b6   : > { %v2512_v16 = vpop.eup %2511 }
 0x3b7   : > { %v2514_v18 = vpop.eup %2513  ;;  %v1093_v19 = vsel %vm947_vm7, %v2512_v16, 0.0 }
 0x3b8   : > { %v1090_v20 = vsel %vm947_vm7, %v2514_v18, 0.0 }
 0x3b9   : > { %1091 = vadd.xlane.f32.xlu2 %v1090_v20  ;;  %1094 = vadd.xlane.f32.xlu1 %v1093_v19  ;;  %v1374_v19 = vld [vmem:[%s3372_s12 + $0x28] sm:$0xff] }
 0x423   : > { %v1086_v23 = vpop.xlane.xlu2 %1085 }
 0x424   : > { %2515 = vrcp.f32 %v1086_v23  ;;  %v1089_v24 = vpop.xlane.xlu1 %1088  ;;  %v1372_v23 = vld [vmem:[%s3372_s12 + $0x18] sm:$0xff] }
 0x425   : > { %2517 = vrcp.f32 %v1089_v24 }
 0x42a   : > { %v2516_v26 = vpop.eup %2515 }
 0x42b   : > { %v2518_v27 = vpop.eup %2517  ;;  %v1100_v28 = vmul.f32 %v2516_v26, %v2508_v8  ;;  %v1379_v8 = vld [vmem:[%s3372_s12 + $0x50] sm:$0xff]  ;;  %v2489_v26 = vld [vmem:[%s3368_s8] ss:$0 sm:$0xff] }
 0x42c   : > { %v1101_v29 = vmul.f32 %v2518_v27, %v2510_v12  ;;  %v1092_v30 = vpop.xlane.xlu2 %1091  ;;  %v1095_v31 = vpop.xlane.xlu1 %1094  ;;  %v1377_v12 = vld [vmem:[%s3372_s12 + $0x40] sm:$0xff] }
 0x42d   : > { %2519 = vrcp.f32 %v1092_v30  ;;  %2354 = vmatmul.msk.f32.vlgmr.msrb.gmra.mxu2 %vm947_vm7, %v1100_v28 }
 0x42e   : > { %2521 = vrcp.f32 %v1095_v31  ;;  %2355 = vmatmul.msk.f32.vlgmr.msrb.gmra.mxu3 %vm947_vm7, %v1101_v29  ;;  %1360 = vmatpush.msrb.mxu2 %v1340_v61  ;;  %v2490_v29 = vld [vmem:[%s3369_s9] ss:$0 sm:$0xff]  ;;  %v2384_v61 = vld [vmem:[%s3365_s5 + $0x218] sm:$0xff] }
 0x42f   : > { %1385 = vmatpush.msrb.mxu3 %v1384_v0  ;;  %v2387_v0 = vld [vmem:[%s3365_s5 + $0x230] sm:$0xff] }
 0x431   : > { %1386 = vmatpush.msrb.mxu3 %v1383_v1 }
 0x433   : > { %v2520_v32 = vpop.eup %2519  ;;  %1387 = vmatpush.msrb.mxu3 %v1382_v2  ;;  %v2378_v2 = vld [vmem:[%s3365_s5 + $0x1e8] sm:$0xff] }
 0x434   : > { %v2522_v33 = vpop.eup %2521  ;;  %v1102_v34 = vmul.f32 %v2520_v32, %v2514_v18  ;;  %v1371_v32 = vld [vmem:[%s3372_s12 + $0x10] sm:$0xff] }
 0x435   : > { %v1103_v35 = vmul.f32 %v2522_v33, %v2512_v16  ;;  %1388 = vmatpush.msrb.mxu3 %v1381_v5  ;;  %v1375_v16 = vld [vmem:[%s3372_s12 + $0x30] sm:$0xff]  ;;  %v1370_v33 = vld [vmem:[%s3372_s12 + $0x8] sm:$0xff] }
 0x436   : > { %2356 = vmatmul.msk.f32.vlgmr.msra.gmra.mxu0 %vm947_vm7, %v1102_v34  ;;  %v1369_v34 = vld [vmem:[%s3372_s12] sm:$0xff]  ;;  %v2386_v5 = vld [vmem:[%s3365_s5 + $0x228] sm:$0xff] }
 0x437   : > { %2357 = vmatmul.msk.f32.vlgmr.msrb.gmra.mxu1 %vm947_vm7, %v1103_v35  ;;  %1389 = vmatpush.msrb.mxu3 %v1380_v7  ;;  %v2491_v35 = vld [vmem:[%s3371_s11] ss:$0 sm:$0xff] }
 0x438   : > { %v2381_v7 = vld [vmem:[%s3365_s5 + $0x200] sm:$0xff] }
 0x439   : > { %1390 = vmatpush.msrb.mxu3 %v1379_v8 }
 0x43b   : > { %1391 = vmatpush.msrb.mxu3 %v1378_v9  ;;  %v2385_v9 = vld [vmem:[%s3365_s5 + $0x220] sm:$0xff] }
 0x43d   : > { %1392 = vmatpush.msrb.mxu3 %v1377_v12 }
 0x43f   : > { %1393 = vmatpush.msrb.mxu3 %v1376_v14 }
 0x441   : > { %1394 = vmatpush.msrb.mxu3 %v1375_v16 }
 0x443   : > { %1395 = vmatpush.msrb.mxu3 %v1374_v19  ;;  %v2493_v19 = vld [vmem:[%s3363_s3 + $0x1] ss:$0 sm:$0xff] }
 0x445   : > { %1396 = vmatpush.msrb.mxu3 %v1373_v21  ;;  %v2494_v21 = vld [vmem:[%s3364_s4 + $0x1] ss:$0 sm:$0xff] }
 0x447   : > { %1397 = vmatpush.msrb.mxu3 %v1372_v23 }
 0x449   : > { %1398 = vmatpush.msrb.mxu3 %v1371_v32  ;;  %v2390_v32 = vld [vmem:[%s3365_s5 + $0x248] sm:$0xff] }
 0x44b   : > { %1399 = vmatpush.msrb.mxu3 %v1370_v33  ;;  %v2394_v33 = vld [vmem:[%s3365_s5 + $0x268] sm:$0xff] }
 0x44d   : > { %1400 = vmatpush.msrb.mxu3 %v1369_v34  ;;  %v2398_v34 = vld [vmem:[%s3365_s5 + $0x288] sm:$0xff] }
 0x4b0   : > { %v1124_v38 = vpop.f32.mrf.mxu2 }
 0x4b1   : > { %v1147_v39 = vpop.f32.mrf.mxu3  ;;  %2358 = vmatmul.msk.f32.vlgmr.msra.gmra.mxu2 %vm947_vm7, %v1124_v38 }
 0x4b2   : > { %2359 = vmatmul.msk.f32.vlgmr.msra.gmra.mxu3 %vm947_vm7, %v1147_v39  ;;  %v2492_v39 = vld [vmem:[%s3373_s13] ss:$0 sm:$0xff] }
 0x4b3   : > { %v1170_v40 = vpop.f32.mrf.mxu0 }
 0x4b4   : > { %v1193_v41 = vpop.f32.mrf.mxu1  ;;  %2360 = vmatmul.msk.f32.vlgmr.msrb.gmra.mxu0 %vm947_vm7, %v1170_v40 }
 0x4b5   : > { %2361 = vmatmul.msk.f32.vlgmr.msra.gmra.mxu1 %vm947_vm7, %v1193_v41 }
 0x531   : > { %v1266_v43 = vpop.f32.mrf.mxu0 }
 0x532   : > { %v1289_v47 = vpop.f32.mrf.mxu1  ;;  %v1295_v49 = vsel %vm618_vm2, %v1266_v43, 0.0 }
 0x533   : > { %v1297_v52 = vsel %vm618_vm2, %v1289_v47, 0.0 }
 0x534   : > { %v1220_v42 = vpop.f32.mrf.mxu2 }
 0x535   : > { %v1292_v44 = vsel %vm618_vm2, %v1220_v42, 0.0  ;;  %v1243_v45 = vpop.f32.mrf.mxu3 }
 0x536   : > { %v1293_v46 = vsel %vm618_vm2, %v1243_v45, 0.0 }
 0x537   : > { %v1294_v48 = vadd.f32 %v1293_v46, %v1292_v44 }
 0x539   : > { %v1296_v51 = vadd.f32 %v1295_v49, %v1294_v48  ;;  %v2368_v49 = vld [vmem:[%s3365_s5 + $0x198] sm:$0xff] }
 0x53a   : > { %1509 = vmatpush.msra.mxu0 %v2368_v49  ;;  %v2405_v49 = vld [vmem:[%s3365_s5 + $0x2c0] sm:$0xff] }
 0x53b   : > { %v1298_v53 = vadd.f32 %v1297_v52, %v1296_v51  ;;  %v2372_v51 = vld [vmem:[%s3365_s5 + $0x1b8] sm:$0xff] }
 0x53c   : > { %v2376_v52 = vld [vmem:[%s3365_s5 + $0x1d8] sm:$0xff]  ;;  %1529 = vmatpush.msrb.mxu1 %v2372_v51  ;;  %v2409_v51 = vld [vmem:[%s3365_s5 + $0x2e0] sm:$0xff] }
 0x53d   : > { %v1299_v55 = vadd.f32 %v1298_v53, %v2700_v17  ;;  %v1339_v17 = vld [vmem:[%s3370_s10 + $0x10] sm:$0xff] }
 0x53e   : > { %1361 = vmatpush.msrb.mxu2 %v1339_v17  ;;  %v2367_v53 = vld [vmem:[%s3365_s5 + $0x190] sm:$0xff]  ;;  %v2388_v17 = vld [vmem:[%s3365_s5 + $0x238] sm:$0xff] }
 0x53f   : > { %v2935_v56 = vadd.f32 %v2488_v54, %v1299_v55  ;;  %v2371_v54 = vld [vmem:[%s3365_s5 + $0x1b0] sm:$0xff]  ;;  %1510 = vmatpush.msra.mxu0 %v2367_v53 }
 0x540   : > { %1362 = vmatpush.msrb.mxu2 %v1338_v62  ;;  %v2375_v55 = vld [vmem:[%s3365_s5 + $0x1d0] sm:$0xff]  ;;  %1530 = vmatpush.msrb.mxu1 %v2371_v54 }
 0x541   : > { %v1307_v10 = vsel %vm618_vm2, %v2935_v56, 0.0  ;;  %v2379_v62 = vld [vmem:[%s3365_s5 + $0x1f0] sm:$0xff] }
 0x542   : > { %1308 = vadd.xlane.f32.xlu2 %v1307_v10  ;;  %1363 = vmatpush.msrb.mxu2 %v1337_v63  ;;  %v2370_v10 = vld [vmem:[%s3365_s5 + $0x1a8] sm:$0xff]  ;;  %v2383_v63 = vld [vmem:[%s3365_s5 + $0x210] sm:$0xff] }
 0x543   : > { %1531 = vmatpush.msrb.mxu1 %v2370_v10 }
 0x544   : > { %1549 = vmatpush.msra.mxu2 %v2376_v52 }
 0x546   : > { %1550 = vmatpush.msra.mxu2 %v2375_v55 }
 0x5b5   : > { %v1309_v57 = vpop.xlane.xlu2 %1308 }
 0x5b6   : > { %v1310_v58 = vmul.f32 %v1309_v57, %v2704_v25  ;;  %v2374_v57 = vld [vmem:[%s3365_s5 + $0x1c8] sm:$0xff] }
 0x5b7   : > { %1551 = vmatpush.msra.mxu2 %v2374_v57 }
 0x5b8   : > { %v1311_v11 = vsub.f32 %v2935_v56, %v1310_v58  ;;  %v2365_v58 = vld [vmem:[%s3365_s5 + $0x180] sm:$0xff] }
 0x5ba   : > { %v1312_v59 = vmul.f32 %v1311_v11, %v1311_v11 }
 0x5bc   : > { %v1313_v60 = vsel %vm618_vm2, %v1312_v59, 0.0  ;;  %v2373_v59 = vld [vmem:[%s3365_s5 + $0x1c0] sm:$0xff] }
 0x5bd   : > { %1314 = vadd.xlane.f32.xlu1 %v1313_v60  ;;  %1552 = vmatpush.msra.mxu2 %v2373_v59  ;;  %v2380_v60 = vld [vmem:[%s3365_s5 + $0x1f8] sm:$0xff] }
 0x630   : > { %v1315_v3 = vpop.xlane.xlu1 %1314 }
 0x631   : > { %v1316_v4 = vmul.f32 %v1315_v3, %v2704_v25  ;;  %v2382_v3 = vld [vmem:[%s3365_s5 + $0x208] sm:$0xff] }
 0x633   : > { %v1317_v6 = vadd.f32 1e-05, %v1316_v4 }
 0x635   : > { %2523 = vrsqrt.f32 %v1317_v6  ;;  %vm1324_vm10 = vweird.f32 %v1317_v6 }
 0x63b   : > { %v2524_v13 = vpop.eup %2523 }
 0x63c   : > { %v1319_v15 = vmul.f32 %v2524_v13, %v1317_v6  ;;  %vm1325_vm9 = vweird.f32 %v2524_v13  ;;  %v2377_v6 = vld [vmem:[%s3365_s5 + $0x1e0] sm:$0xff] }
 0x63d   : > { %vm1326_vm11 = vmor %vm1324_vm10, %vm1325_vm9 }
 0x63e   : > { %v1320_v18 = vmul.f32 %v2524_v13, %v1319_v15 }
 0x640   : > { %v1321_v20 = vmul.f32 0.5, %v1320_v18 }
 0x642   : > { %v1322_v22 = vsub.f32 1.5, %v1321_v20 }
 0x644   : > { %v1323_v24 = vmul.f32 %v2524_v13, %v1322_v22 }
 0x646   : > { %v1327_v27 = vsel %vm1326_vm11, %v2524_v13, %v1323_v24 }
 0x647   : > { %v1328_v28 = vmul.f32 %v1327_v27, %v1311_v11  ;;  %v2369_v11 = vld [vmem:[%s3365_s5 + $0x1a0] sm:$0xff]  ;;  %v2396_v27 = vld [vmem:[%s3365_s5 + $0x278] sm:$0xff] }
 0x648   : > { %1532 = vmatpush.msrb.mxu1 %v2369_v11 }
 0x649   : > { %v1332_v30 = vmul.f32 %v2489_v26, %v1328_v28  ;;  %v2392_v26 = vld [vmem:[%s3365_s5 + $0x258] sm:$0xff] }
 0x64a   : > { %1589 = vmatpush.msra.mxu1 %v2384_v61  ;;  %v2400_v28 = vld [vmem:[%s3365_s5 + $0x298] sm:$0xff] }
 0x64b   : > { %v1336_v31 = vadd.f32 %v2490_v29, %v1332_v30  ;;  %v2391_v29 = vld [vmem:[%s3365_s5 + $0x250] sm:$0xff] }
 0x64c   : > { %1590 = vmatpush.msra.mxu1 %v2383_v63  ;;  %v2395_v30 = vld [vmem:[%s3365_s5 + $0x270] sm:$0xff] }
 0x64d   : > { %2362 = vmatmul.msk.f32.vlgmr.msrb.gmra.mxu2 %vm618_vm2, %v1336_v31  ;;  %v2399_v31 = vld [vmem:[%s3365_s5 + $0x290] sm:$0xff] }
 0x64e   : > { %1609 = vmatpush.msrb.mxu2 %v2388_v17  ;;  %1591 = vmatpush.msra.mxu1 %v2382_v3 }
 0x650   : > { %1610 = vmatpush.msrb.mxu2 %v2387_v0  ;;  %1592 = vmatpush.msra.mxu1 %v2381_v7 }
 0x652   : > { %1611 = vmatpush.msrb.mxu2 %v2386_v5 }
 0x654   : > { %1612 = vmatpush.msrb.mxu2 %v2385_v9 }
 0x6d0   : > { %v1365_v36 = vpop.f32.mrf.mxu2 }
 0x6d1   : > { %v1366_v37 = vadd.f32 %v2491_v35, %v1365_v36  ;;  %v2389_v35 = vld [vmem:[%s3365_s5 + $0x240] sm:$0xff] }
 0x6d2   : > { %v2393_v36 = vld [vmem:[%s3365_s5 + $0x260] sm:$0xff] }
 0x6d3   : > { %v1368_v38 = vmax.f32 %v1366_v37, 0.0  ;;  %v2397_v37 = vld [vmem:[%s3365_s5 + $0x280] sm:$0xff] }
 0x6d5   : > { %1401 = vmatmul.f32.vlgmr.msrb.gmra.mxu3 %v1368_v38  ;;  %v2404_v38 = vld [vmem:[%s3365_s5 + $0x2b8] sm:$0xff] }
 0x758   : > { %v1402_v40 = vpop.f32.mrf.mxu3 }
 0x759   : > { %v1405_v41 = vadd.f32 %v1402_v40, %v2935_v56  ;;  %v2366_v56 = vld [vmem:[%s3365_s5 + $0x188] sm:$0xff]  ;;  %v2412_v40 = vld [vmem:[%s3365_s5 + $0x2f8] sm:$0xff] }
 0x75a   : > { %1511 = vmatpush.msra.mxu0 %v2366_v56 }
 0x75b   : > { %v3017_v42 = vadd.f32 %v2492_v39, %v1405_v41  ;;  %v2408_v39 = vld [vmem:[%s3365_s5 + $0x2d8] sm:$0xff]  ;;  %v2403_v41 = vld [vmem:[%s3365_s5 + $0x2b0] sm:$0xff] }
 0x75c   : > { %1512 = vmatpush.msra.mxu0 %v2365_v58 }
 0x75d   : > { %v1415_v43 = vsel %vm618_vm2, %v3017_v42, 0.0 }
 0x75e   : > { %1416 = vadd.xlane.f32.xlu2 %v1415_v43  ;;  %1569 = vmatpush.msrb.mxu0 %v2380_v60  ;;  %v2407_v43 = vld [vmem:[%s3365_s5 + $0x2d0] sm:$0xff] }
 0x760   : > { %1570 = vmatpush.msrb.mxu0 %v2379_v62 }
 0x762   : > { %1571 = vmatpush.msrb.mxu0 %v2378_v2 }
 0x764   : > { %1572 = vmatpush.msrb.mxu0 %v2377_v6 }
 0x7d1   : > { %v1417_v44 = vpop.xlane.xlu2 %1416 }
 0x7d2   : > { %v1418_v45 = vmul.f32 %v1417_v44, %v2704_v25  ;;  %v2411_v44 = vld [vmem:[%s3365_s5 + $0x2f0] sm:$0xff] }
 0x7d4   : > { %v3023_v46 = vsub.f32 %v3017_v42, %v1418_v45  ;;  %v2402_v45 = vld [vmem:[%s3365_s5 + $0x2a8] sm:$0xff] }
 0x7d6   : > { %v1420_v47 = vmul.f32 %v3023_v46, %v3023_v46 }
 0x7d8   : > { %v1421_v48 = vsel %vm618_vm2, %v1420_v47, 0.0  ;;  %v2410_v47 = vld [vmem:[%s3365_s5 + $0x2e8] sm:$0xff] }
 0x7d9   : > { %1422 = vadd.xlane.f32.xlu1 %v1421_v48  ;;  %v2401_v48 = vld [vmem:[%s3365_s5 + $0x2a0] sm:$0xff] }
 0x84c   : > { %v1423_v1 = vpop.xlane.xlu1 %1422 }
 0x84d   : > { %v1424_v4 = vmul.f32 %v1423_v1, %v2704_v25 }
 0x84f   : > { %v1425_v8 = vadd.f32 1e-05, %v1424_v4 }
 0x851   : > { %2525 = vrsqrt.f32 %v1425_v8  ;;  %vm1432_vm13 = vweird.f32 %v1425_v8 }
 0x857   : > { %v2526_v12 = vpop.eup %2525 }
 0x858   : > { %v1427_v13 = vmul.f32 %v2526_v12, %v1425_v8  ;;  %vm1433_vm12 = vweird.f32 %v2526_v12 }
 0x859   : > { %vm1434_vm14 = vmor %vm1432_vm13, %vm1433_vm12 }
 0x85a   : > { %v1428_v14 = vmul.f32 %v2526_v12, %v1427_v13 }
 0x85c   : > { %v1429_v15 = vmul.f32 0.5, %v1428_v14 }
 0x85e   : > { %v1430_v16 = vsub.f32 1.5, %v1429_v15 }
 0x860   : > { %v1431_v18 = vmul.f32 %v2526_v12, %v1430_v16 }
 0x862   : > { %v1435_v20 = vsel %vm1434_vm14, %v2526_v12, %v1431_v18 }
 0x863   : > { %v1436_v22 = vmul.f32 %v1435_v20, %v3023_v46  ;;  %v2406_v46 = vld [vmem:[%s3365_s5 + $0x2c8] sm:$0xff] }
 0x865   : > { %v1440_v23 = vmul.f32 %v2493_v19, %v1436_v22 }
 0x867   : > { %v1444_v24 = vadd.f32 %v2494_v21, %v1440_v23 }
 0x869   : > { %2413 = vmatmul.msk.f32.vlgmr.msra.gmra.mxu0 %vm618_vm2, %v1444_v24  ;;  %2414 = vmatmul.msk.f32.vlgmr.msrb.gmra.mxu1 %vm618_vm2, %v1444_v24 }
 0x86a   : > { %2415 = vmatmul.msk.f32.vlgmr.msra.gmra.mxu2 %vm618_vm2, %v1444_v24  ;;  %1629 = vmatpush.msra.mxu0 %v2392_v26 }
 0x86b   : > { %1649 = vmatpush.msrb.mxu1 %v2396_v27  ;;  %1669 = vmatpush.msra.mxu2 %v2400_v28 }
 0x86c   : > { %1630 = vmatpush.msra.mxu0 %v2391_v29 }
 0x86d   : > { %1650 = vmatpush.msrb.mxu1 %v2395_v30  ;;  %1670 = vmatpush.msra.mxu2 %v2399_v31 }
 0x86e   : > { %1631 = vmatpush.msra.mxu0 %v2390_v32 }
 0x86f   : > { %1651 = vmatpush.msrb.mxu1 %v2394_v33  ;;  %1671 = vmatpush.msra.mxu2 %v2398_v34 }
 0x870   : > { %1632 = vmatpush.msra.mxu0 %v2389_v35 }
 0x871   : > { %2416 = vmatmul.msk.f32.vlgmr.msrb.gmra.mxu0 %vm618_vm2, %v1444_v24  ;;  %2417 = vmatmul.msk.f32.vlgmr.msra.gmra.mxu1 %vm618_vm2, %v1444_v24 }
 0x872   : > { %2418 = vmatmul.msk.f32.vlgmr.msrb.gmra.mxu2 %vm618_vm2, %v1444_v24  ;;  %1652 = vmatpush.msrb.mxu1 %v2393_v36 }
 0x873   : > { %1672 = vmatpush.msra.mxu2 %v2397_v37  ;;  %1689 = vmatpush.msrb.mxu0 %v2404_v38 }
 0x874   : > { %1709 = vmatpush.msra.mxu1 %v2408_v39 }
 0x875   : > { %1729 = vmatpush.msrb.mxu2 %v2412_v40  ;;  %1690 = vmatpush.msrb.mxu0 %v2403_v41 }
 0x876   : > { %1710 = vmatpush.msra.mxu1 %v2407_v43 }
 0x877   : > { %1730 = vmatpush.msrb.mxu2 %v2411_v44  ;;  %1691 = vmatpush.msrb.mxu0 %v2402_v45 }
 0x878   : > { %1711 = vmatpush.msra.mxu1 %v2406_v46 }
 0x879   : > { %1731 = vmatpush.msrb.mxu2 %v2410_v47  ;;  %2419 = vmatmul.msk.f32.vlgmr.msra.gmra.mxu0 %vm618_vm2, %v1444_v24 }
 0x87a   : > { %2420 = vmatmul.msk.f32.vlgmr.msrb.gmra.mxu1 %vm618_vm2, %v1444_v24  ;;  %2421 = vmatmul.msk.f32.vlgmr.msra.gmra.mxu2 %vm618_vm2, %v1444_v24 }
 0x87b   : > { %1692 = vmatpush.msrb.mxu0 %v2401_v48  ;;  %1712 = vmatpush.msra.mxu1 %v2405_v49  ;;  %v2438_v49 = vld [vmem:[%s3366_s6 + $0x28] sm:$0xff] }
 0x87c   : > { %1732 = vmatpush.msrb.mxu2 %v2409_v51  ;;  %v2437_v51 = vld [vmem:[%s3366_s6 + $0x20] sm:$0xff] }
 0x881   : > { %2422 = vmatmul.msk.f32.vlgmr.msrb.gmra.mxu0 %vm618_vm2, %v1444_v24 }
 0x882   : > { %2423 = vmatmul.msk.f32.vlgmr.msra.gmra.mxu1 %vm618_vm2, %v1444_v24  ;;  %2424 = vmatmul.msk.f32.vlgmr.msrb.gmra.mxu2 %vm618_vm2, %v1444_v24 }
 0x8e6   : > { %v1514_v52 = vpop.f32.mrf.mxu0  ;;  %v1534_v53 = vpop.f32.mrf.mxu1 }
 0x8ed   : > { %v1554_v54 = vpop.f32.mrf.mxu2 }
 0x8ee   : > { %v1574_v55 = vpop.f32.mrf.mxu0  ;;  %v1594_v56 = vpop.f32.mrf.mxu1 }
 0x8ef   : > { %2425 = vmatpush.xpose.msk.msra.mxu3 %vm947_vm7, %v1594_v56 }
 0x8f2   : > { %2426 = vmatmul.msk.f32.vlgmr.msra.gmra.mxu3 %vm947_vm7, %v1514_v52  ;;  %v2439_v52 = vld [vmem:[%s3366_s6 + $0x30] sm:$0xff] }
 0x8f5   : > { %v1614_v10 = vpop.f32.mrf.mxu2 }
 0x8f6   : > { %2427 = vmatpush.xpose.msk.msra.mxu0 %vm947_vm7, %v1614_v10  ;;  %v1634_v57 = vpop.f32.mrf.mxu0 }
 0x8f7   : > { %v1654_v58 = vpop.f32.mrf.mxu1  ;;  %2429 = vmatpush.xpose.msk.msrb.mxu1 %vm947_vm7, %v1634_v57 }
 0x8f8   : > { %2431 = vmatpush.xpose.msk.msra.mxu2 %vm947_vm7, %v1654_v58 }
 0x8f9   : > { %2428 = vmatmul.msk.f32.vlgmr.msra.gmra.mxu0 %vm947_vm7, %v1534_v53  ;;  %v2440_v53 = vld [vmem:[%s3366_s6 + $0x38] sm:$0xff] }
 0x8fa   : > { %2430 = vmatmul.msk.f32.vlgmr.msrb.gmra.mxu1 %vm947_vm7, %v1554_v54 }
 0x8fb   : > { %2432 = vmatmul.msk.f32.vlgmr.msra.gmra.mxu2 %vm947_vm7, %v1574_v55 }
 0x8fd   : > { %v1674_v11 = vpop.f32.mrf.mxu2 }
 0x8fe   : > { %1911 = vmatpush.msrb.mxu3 %v1674_v11  ;;  %v1694_v59 = vpop.f32.mrf.mxu0 }
 0x8ff   : > { %v1714_v60 = vpop.f32.mrf.mxu1  ;;  %1934 = vmatpush.msrb.mxu0 %v1694_v59 }
 0x900   : > { %1957 = vmatpush.msra.mxu1 %v1714_v60  ;;  %2008 = vmatpush.msra.mxu3 %v2437_v51 }
 0x901   : > { %2031 = vmatpush.msra.mxu0 %v2438_v49  ;;  %v2498_v49 = vld [vmem:[%s3371_s11 + $0x1] ss:$0 sm:$0xff] }
 0x902   : > { %2054 = vmatpush.msrb.mxu1 %v2439_v52 }
 0x905   : > { %v1734_v61 = vpop.f32.mrf.mxu2 }
 0x906   : > { %1980 = vmatpush.msrb.mxu2 %v1734_v61 }
 0x908   : > { %2077 = vmatpush.msra.mxu2 %v2440_v53 }
 0x975   : > { %v1760_v17 = vpop.f32.mrf.mxu3 }
 0x976   : > { %v1841_v62 = vmul.f32 0.17677669, %v1760_v17  ;;  %v1786_v63 = vpop.f32.mrf.mxu0 }
 0x977   : > { %v1842_v0 = vmul.f32 0.17677669, %v1786_v63  ;;  %v1812_v1 = vpop.f32.mrf.mxu1 }
 0x978   : > { %v1845_v2 = vsel %vm2887_vm8, %v1841_v62, -1e+30  ;;  %v1843_v5 = vmul.f32 0.17677669, %v1812_v1 }
 0x979   : > { %v1849_v3 = vsel %vm947_vm7, %v1845_v2, -inf  ;;  %v1846_v4 = vsel %vm2887_vm8, %v1842_v0, -1e+30 }
 0x97a   : > { %1850 = vmax.xlane.f32.xlu2 %v1849_v3  ;;  %v1852_v6 = vsel %vm947_vm7, %v1846_v4, -inf  ;;  %v1847_v9 = vsel %vm2887_vm8, %v1843_v5, -1e+30 }
 0x97b   : > { %1853 = vmax.xlane.f32.xlu1 %v1852_v6  ;;  %v1855_v14 = vsel %vm947_vm7, %v1847_v9, -inf }
 0x97e   : > { %v1838_v7 = vpop.f32.mrf.mxu2 }
 0x97f   : > { %v1844_v8 = vmul.f32 0.17677669, %v1838_v7 }
 0x981   : > { %v1848_v12 = vsel %vm2887_vm8, %v1844_v8, -1e+30 }
 0x982   : > { %v1858_v13 = vsel %vm947_vm7, %v1848_v12, -inf  ;;  %1856 = vmax.xlane.f32.xlu2 %v1855_v14  ;;  %v2449_v14 = vld [vmem:[%s3370_s10 + $0x28] sm:$0xff] }
 0x983   : > { %1859 = vmax.xlane.f32.xlu0 %v1858_v13  ;;  %v2451_v13 = vld [vmem:[%s3370_s10 + $0x38] sm:$0xff] }
 0x9ed   : > { %v1851_v15 = vpop.xlane.xlu2 %1850 }
 0x9ee   : > { %v1861_v16 = vsub.f32 %v1845_v2, %v1851_v15  ;;  %v1854_v18 = vpop.xlane.xlu1 %1853  ;;  %v2495_v2 = vld [vmem:[%s3367_s7 + $0x1] ss:$0 sm:$0xff] }
 0x9ef   : > { %v1862_v19 = vsub.f32 %v1846_v4, %v1854_v18  ;;  %v2448_v15 = vld [vmem:[%s3370_s10 + $0x20] sm:$0xff]  ;;  %v2468_v18 = vld [vmem:[%s3372_s12 + $0xf0] sm:$0xff] }
 0x9f0   : > { %v1865_v20 = vmul.f32 1.442695, %v1861_v16  ;;  %v2469_v16 = vld [vmem:[%s3372_s12 + $0xf8] sm:$0xff] }
 0x9f1   : > { %v1867_v21 = vmul.f32 1.442695, %v1862_v19  ;;  %v2467_v19 = vld [vmem:[%s3372_s12 + $0xe8] sm:$0xff] }
 0x9f2   : > { %2527 = vpow2.f32 %v1865_v20 }
 0x9f3   : > { %2529 = vpow2.f32 %v1867_v21 }
 0x9f5   : > { %v1857_v23 = vpop.xlane.xlu2 %1856 }
 0x9f6   : > { %v1860_v22 = vpop.xlane.xlu0 %1859  ;;  %v1863_v26 = vsub.f32 %v1847_v9, %v1857_v23 }
 0x9f7   : > { %v1864_v24 = vsub.f32 %v1848_v12, %v1860_v22  ;;  %v2466_v22 = vld [vmem:[%s3372_s12 + $0xe0] sm:$0xff] }
 0x9f8   : > { %v2528_v50 = vpop.eup %2527  ;;  %v1869_v28 = vmul.f32 1.442695, %v1863_v26  ;;  %v2464_v26 = vld [vmem:[%s3372_s12 + $0xd0] sm:$0xff] }
 0x9f9   : > { %v1871_v27 = vmul.f32 1.442695, %v1864_v24  ;;  %v2530_v29 = vpop.eup %2529  ;;  %v1873_v30 = vsel %vm947_vm7, %v2528_v50, 0.0  ;;  %v2465_v24 = vld [vmem:[%s3372_s12 + $0xd8] sm:$0xff] }
 0x9fa   : > { %1874 = vadd.xlane.f32.xlu0 %v1873_v30  ;;  %v1876_v31 = vsel %vm947_vm7, %v2530_v29, 0.0 }
 0x9fb   : > { %2531 = vpow2.f32 %v1871_v27  ;;  %1877 = vadd.xlane.f32.xlu2 %v1876_v31  ;;  %v2462_v27 = vld [vmem:[%s3372_s12 + $0xc0] sm:$0xff]  ;;  %v2460_v31 = vld [vmem:[%s3372_s12 + $0xb0] sm:$0xff] }
 0x9fc   : > { %2533 = vpow2.f32 %v1869_v28 }
 0xa01   : > { %v2532_v32 = vpop.eup %2531 }
 0xa02   : > { %v2534_v33 = vpop.eup %2533  ;;  %v1882_v34 = vsel %vm947_vm7, %v2532_v32, 0.0 }
 0xa03   : > { %v1879_v35 = vsel %vm947_vm7, %v2534_v33, 0.0  ;;  %1883 = vadd.xlane.f32.xlu1 %v1882_v34 }
 0xa04   : > { %1880 = vadd.xlane.f32.xlu0 %v1879_v35  ;;  %v2458_v35 = vld [vmem:[%s3372_s12 + $0xa0] sm:$0xff] }
 0xa6d   : > { %v1875_v36 = vpop.xlane.xlu0 %1874 }
 0xa6e   : > { %2535 = vrcp.f32 %v1875_v36  ;;  %v1878_v37 = vpop.xlane.xlu2 %1877 }
 0xa6f   : > { %2537 = vrcp.f32 %v1878_v37  ;;  %v2457_v37 = vld [vmem:[%s3372_s12 + $0x98] sm:$0xff] }
 0xa74   : > { %v2536_v38 = vpop.eup %2535 }
 0xa75   : > { %v2538_v39 = vpop.eup %2537  ;;  %v1889_v40 = vmul.f32 %v2536_v38, %v2528_v50  ;;  %v2463_v50 = vld [vmem:[%s3372_s12 + $0xc8] sm:$0xff] }
 0xa76   : > { %v1884_v41 = vpop.xlane.xlu1 %1883  ;;  %v1890_v43 = vmul.f32 %v2538_v39, %v2530_v29  ;;  %v2461_v29 = vld [vmem:[%s3372_s12 + $0xb8] sm:$0xff]  ;;  %v2496_v39 = vld [vmem:[%s3368_s8 + $0x1] ss:$0 sm:$0xff] }
 0xa77   : > { %v1881_v44 = vpop.xlane.xlu0 %1880  ;;  %2539 = vrcp.f32 %v1884_v41  ;;  %2433 = vmatmul.msk.f32.vlgmr.msrb.gmra.mxu3 %vm947_vm7, %v1889_v40 }
 0xa78   : > { %2541 = vrcp.f32 %v1881_v44  ;;  %2434 = vmatmul.msk.f32.vlgmr.msrb.gmra.mxu0 %vm947_vm7, %v1890_v43  ;;  %2155 = vmatpush.msrb.mxu3 %v2451_v13  ;;  %v2497_v43 = vld [vmem:[%s3369_s9 + $0x1] ss:$0 sm:$0xff] }
 0xa79   : > { %2181 = vmatpush.msrb.mxu0 %v2469_v16  ;;  %v2502_v16 = vld [vmem:[%s3377_s17] ss:$0 sm:$0xff] }
 0xa7b   : > { %2182 = vmatpush.msrb.mxu0 %v2468_v18 }
 0xa7d   : > { %v2540_v45 = vpop.eup %2539  ;;  %2183 = vmatpush.msrb.mxu0 %v2467_v19 }
 0xa7e   : > { %v2542_v46 = vpop.eup %2541  ;;  %v1892_v47 = vmul.f32 %v2540_v45, %v2532_v32 }
 0xa7f   : > { %v1891_v48 = vmul.f32 %v2542_v46, %v2534_v33  ;;  %2184 = vmatpush.msrb.mxu0 %v2466_v22  ;;  %v2459_v33 = vld [vmem:[%s3372_s12 + $0xa8] sm:$0xff]  ;;  %v2456_v46 = vld [vmem:[%s3372_s12 + $0x90] sm:$0xff] }
 0xa80   : > { %2436 = vmatmul.msk.f32.vlgmr.msrb.gmra.mxu2 %vm947_vm7, %v1892_v47  ;;  %v2455_v47 = vld [vmem:[%s3372_s12 + $0x88] sm:$0xff] }
 0xa81   : > { %2435 = vmatmul.msk.f32.vlgmr.msra.gmra.mxu1 %vm947_vm7, %v1891_v48  ;;  %2185 = vmatpush.msrb.mxu0 %v2465_v24  ;;  %v2454_v48 = vld [vmem:[%s3372_s12 + $0x80] sm:$0xff] }
 0xa83   : > { %2186 = vmatpush.msrb.mxu0 %v2464_v26 }
 0xa85   : > { %2187 = vmatpush.msrb.mxu0 %v2463_v50 }
 0xa87   : > { %2188 = vmatpush.msrb.mxu0 %v2462_v27 }
 0xa89   : > { %2189 = vmatpush.msrb.mxu0 %v2461_v29 }
 0xa8b   : > { %2190 = vmatpush.msrb.mxu0 %v2460_v31 }
 0xa8d   : > { %2191 = vmatpush.msrb.mxu0 %v2459_v33 }
 0xa8f   : > { %2192 = vmatpush.msrb.mxu0 %v2458_v35 }
 0xa91   : > { %2193 = vmatpush.msrb.mxu0 %v2457_v37 }
 0xa93   : > { %2194 = vmatpush.msrb.mxu0 %v2456_v46 }
 0xa95   : > { %2195 = vmatpush.msrb.mxu0 %v2455_v47 }
 0xa97   : > { %2196 = vmatpush.msrb.mxu0 %v2454_v48 }
 0xaf5   : > { %v1936_v54 = vpop.f32.mrf.mxu0 }
 0xaf6   : > { %2442 = vmatmul.msk.f32.vlgmr.msra.gmra.mxu0 %vm947_vm7, %v1936_v54  ;;  %v2499_v54 = vld [vmem:[%s3373_s13 + $0x1] ss:$0 sm:$0xff] }
 0xafa   : > { %v1913_v55 = vpop.f32.mrf.mxu3 }
 0xafb   : > { %2441 = vmatmul.msk.f32.vlgmr.msra.gmra.mxu3 %vm947_vm7, %v1913_v55 }
 0xafe   : > { %v1959_v56 = vpop.f32.mrf.mxu1 }
 0xaff   : > { %2443 = vmatmul.msk.f32.vlgmr.msrb.gmra.mxu1 %vm947_vm7, %v1959_v56 }
 0xb03   : > { %v1982_v10 = vpop.f32.mrf.mxu2 }
 0xb04   : > { %2444 = vmatmul.msk.f32.vlgmr.msra.gmra.mxu2 %vm947_vm7, %v1982_v10 }
 0xb73   : > { %v2033_v57 = vpop.f32.mrf.mxu0 }
 0xb74   : > { %v2083_v59 = vsel %vm618_vm2, %v2033_v57, 0.0 }
 0xb7c   : > { %v2056_v60 = vpop.f32.mrf.mxu1 }
 0xb7d   : > { %v2085_v17 = vsel %vm618_vm2, %v2056_v60, 0.0 }
 0xb7e   : > { %v2010_v58 = vpop.f32.mrf.mxu3 }
 0xb7f   : > { %v2082_v11 = vsel %vm618_vm2, %v2010_v58, 0.0 }
 0xb80   : > { %v2084_v61 = vadd.f32 %v2083_v59, %v2082_v11 }
 0xb82   : > { %v2086_v63 = vadd.f32 %v2085_v17, %v2084_v61  ;;  %v2243_v17 = vld [vmem:[%s3376_s16 + $0x18] sm:$0xff] }
 0xb83   : > { %2263 = vmatpush.msra.mxu1 %v2243_v17 }
 0xb87   : > { %v2079_v62 = vpop.f32.mrf.mxu2 }
 0xb88   : > { %v2087_v0 = vsel %vm618_vm2, %v2079_v62, 0.0  ;;  %v2242_v62 = vld [vmem:[%s3376_s16 + $0x10] sm:$0xff] }
 0xb89   : > { %v2088_v1 = vadd.f32 %v2087_v0, %v2086_v63  ;;  %2264 = vmatpush.msra.mxu1 %v2242_v62  ;;  %v2241_v63 = vld [vmem:[%s3376_s16 + $0x8] sm:$0xff]  ;;  %v2240_v0 = vld [vmem:[%s3376_s16] sm:$0xff] }
 0xb8b   : > { %v2089_v3 = vadd.f32 %v2088_v1, %v3017_v42  ;;  %v2450_v42 = vld [vmem:[%s3370_s10 + $0x30] sm:$0xff]  ;;  %2265 = vmatpush.msra.mxu1 %v2241_v63 }
 0xb8c   : > { %2156 = vmatpush.msrb.mxu3 %v2450_v42 }
 0xb8d   : > { %v3244_v4 = vadd.f32 %v2495_v2, %v2089_v3  ;;  %2266 = vmatpush.msra.mxu1 %v2240_v0 }
 0xb8e   : > { %2157 = vmatpush.msrb.mxu3 %v2449_v14 }
 0xb8f   : > { %v2100_v5 = vsel %vm618_vm2, %v3244_v4, 0.0 }
 0xb90   : > { %2101 = vadd.xlane.f32.xlu1 %v2100_v5  ;;  %2158 = vmatpush.msrb.mxu3 %v2448_v15 }
 0xc03   : > { %v2102_v6 = vpop.xlane.xlu1 %2101 }
 0xc04   : > { %v2103_v7 = vmul.f32 %v2102_v6, %v2704_v25 }
 0xc06   : > { %v2104_v8 = vsub.f32 %v3244_v4, %v2103_v7 }
 0xc08   : > { %v2105_v9 = vmul.f32 %v2104_v8, %v2104_v8 }
 0xc0a   : > { %v2106_v12 = vsel %vm618_vm2, %v2105_v9, 0.0 }
 0xc0b   : > { %2107 = vadd.xlane.f32.xlu2 %v2106_v12  ;;  %v2500_v12 = vld [vmem:[%s3374_s14] ss:$0 sm:$0xff] }
 0xc7e   : > { %v2108_v20 = vpop.xlane.xlu2 %2107 }
 0xc7f   : > { %v2109_v21 = vmul.f32 %v2108_v20, %v2704_v25 }
 0xc81   : > { %v2110_v23 = vadd.f32 1e-05, %v2109_v21 }
 0xc83   : > { %2543 = vrsqrt.f32 %v2110_v23  ;;  %vm2117_vm0 = vweird.f32 %v2110_v23 }
 0xc89   : > { %v2544_v28 = vpop.eup %2543 }
 0xc8a   : > { %v2112_v30 = vmul.f32 %v2544_v28, %v2110_v23  ;;  %vm2118_vm15 = vweird.f32 %v2544_v28 }
 0xc8b   : > { %vm2119_vm1 = vmor %vm2117_vm0, %vm2118_vm15 }
 0xc8c   : > { %v2113_v32 = vmul.f32 %v2544_v28, %v2112_v30 }
 0xc8e   : > { %v2114_v34 = vmul.f32 0.5, %v2113_v32 }
 0xc90   : > { %v2115_v36 = vsub.f32 1.5, %v2114_v34 }
 0xc92   : > { %v2116_v38 = vmul.f32 %v2544_v28, %v2115_v36 }
 0xc94   : > { %v2120_v40 = vsel %vm2119_vm1, %v2544_v28, %v2116_v38 }
 0xc95   : > { %v2121_v41 = vmul.f32 %v2120_v40, %v2104_v8 }
 0xc97   : > { %v2125_v44 = vmul.f32 %v2496_v39, %v2121_v41 }
 0xc99   : > { %v2129_v45 = vadd.f32 %v2497_v43, %v2125_v44 }
 0xc9b   : > { %2453 = vmatmul.msk.f32.vlgmr.msrb.gmra.mxu3 %vm618_vm2, %v2129_v45 }
 0xd1e   : > { %v2160_v51 = vpop.f32.mrf.mxu3 }
 0xd1f   : > { %v2161_v52 = vadd.f32 %v2498_v49, %v2160_v51 }
 0xd21   : > { %v2163_v53 = vmax.f32 %v2161_v52, 0.0 }
 0xd23   : > { %2197 = vmatmul.f32.vlgmr.msrb.gmra.mxu0 %v2163_v53 }
 0xda0   : > { %v2198_v55 = vpop.f32.mrf.mxu0 }
 0xda1   : > { %v2201_v56 = vadd.f32 %v2198_v55, %v3244_v4 }
 0xda3   : > { %v2207_v10 = vadd.f32 %v2499_v54, %v2201_v56 }
 0xda5   : > { %v2210_v57 = vsel %vm618_vm2, %v2207_v10, 0.0 }
 0xda6   : > { %2211 = vadd.xlane.f32.xlu0 %v2210_v57 }
 0xe19   : > { %v2212_v58 = vpop.xlane.xlu0 %2211 }
 0xe1a   : > { %v2213_v11 = vmul.f32 %v2212_v58, %v2704_v25 }
 0xe1c   : > { %v2214_v59 = vsub.f32 %v2207_v10, %v2213_v11 }
 0xe1e   : > { %v2215_v60 = vmul.f32 %v2214_v59, %v2214_v59 }
 0xe20   : > { %v2216_v61 = vsel %vm618_vm2, %v2215_v60, 0.0 }
 0xe21   : > { %2217 = vadd.xlane.f32.xlu1 %v2216_v61 }
 0xe94   : > { %v2218_v1 = vpop.xlane.xlu1 %2217 }
 0xe95   : > { %v2219_v2 = vmul.f32 %v2218_v1, %v2704_v25  ;;  %v2501_v25 = vld [vmem:[%s3375_s15] ss:$0 sm:$0xff] }
 0xe97   : > { %v2220_v3 = vadd.f32 1e-05, %v2219_v2 }
 0xe99   : > { %2545 = vrsqrt.f32 %v2220_v3  ;;  %vm2227_vm4 = vweird.f32 %v2220_v3 }
 0xe9f   : > { %v2546_v4 = vpop.eup %2545 }
 0xea0   : > { %v2222_v5 = vmul.f32 %v2546_v4, %v2220_v3  ;;  %vm2228_vm3 = vweird.f32 %v2546_v4 }
 0xea1   : > { %vm2229_vm5 = vmor %vm2227_vm4, %vm2228_vm3 }
 0xea2   : > { %v2223_v6 = vmul.f32 %v2546_v4, %v2222_v5 }
 0xea4   : > { %v2224_v7 = vmul.f32 0.5, %v2223_v6 }
 0xea6   : > { %v2225_v8 = vsub.f32 1.5, %v2224_v7 }
 0xea8   : > { %v2226_v9 = vmul.f32 %v2546_v4, %v2225_v8 }
 0xeaa   : > { %v2230_v13 = vsel %vm2229_vm5, %v2546_v4, %v2226_v9 }
 0xeab   : > { %v2231_v42 = vmul.f32 %v2230_v13, %v2214_v59 }
 0xead   : > { %v2235_v14 = vmul.f32 %v2500_v12, %v2231_v42 }
 0xeaf   : > { %v2239_v15 = vadd.f32 %v2501_v25, %v2235_v14 }
 0xeb1   : > { %2471 = vmatmul.msk.f32.vlgmr.msra.gmra.mxu1 %vm618_vm2, %v2239_v15 }
 0xf2e   : > { %v2268_v18 = vpop.f32.mrf.mxu1 }
 0xf2f   : > { %v2269_v19 = vadd.f32 %v2502_v16, %v2268_v18 }
 0xf31   : > { %2271 = vst [vmem:[%s570_s1] sm:$0xff] %v2269_v19 }
 0xf32 PF: > { %s28_s27 = sadd.s32 1, %s2553_s27  }
 0xf33   : > { %p25_p4 = scmp.ge.s32.totalorder %s28_s27, 4  }
 0xf35   :  { %27 = sbr.rel (!%p25_p4) target bundleno = 4 (0x4), region = 133 }

</bundles_post_ra>
